<compile_context>
chip_gen: v6e
topology: v6e:2x2x1
jax: 0.10.0
libtpu: 0.0.40
codegen_flags: <defaults>
</compile_context>

<pallas_src>
import jax
import jax.numpy as jnp
from jax import lax
from jax.experimental import pallas as pl
from jax.experimental.pallas import tpu as pltpu


def _round_up(x, m):
    return (x + m - 1) // m * m


def _cdiv(a, b):
    return -(-a // b)


def _make_gru_kernel(T_total, TT, has_remainder):
    """Build the recurrence kernel (T_total/TT/has_remainder are static)."""

    def kernel(gi_ref, whh_ref, bhn_ref, h_ref):
        """One grid step = TT GRU timesteps for one batch block.

        gi_ref : (1, TT, BB, 3*Hp) f32  pre-projected input gates [r|z|n]
                 (b_ih fully folded in; b_hh folded in for the r/z gates).
        whh_ref: (Hp, 3*Hp) bf16        hidden weight W_hh^T, gates [r|z|n].
        bhn_ref: (1, Hp) f32            b_hh for the n gate (stays inside r*()).
        h_ref  : (BB, Hp) f32           OUTPUT block, constant index along the
                 time axis -> VMEM-resident; doubles as the recurrence carry.
        """
        tblk = pl.program_id(1)
        BB, Hp = h_ref.shape

        @pl.when(tblk == 0)
        def _init():
            h_ref[...] = jnp.zeros_like(h_ref)

        # Constant-index operands; tiny relative to the streamed gi blocks.
        # (For very large Hp, single-buffer them via pipeline_mode=pl.Buffered(1).)
        whh = whh_ref[...]                                        # (Hp, 3Hp) bf16
        # Hoist the broadcast out of the unrolled loop (JAX does not CSE it).
        bhn = jnp.broadcast_to(bhn_ref[...], (BB, Hp))            # (BB, Hp) f32

        if has_remainder:
            valid = jnp.minimum(T_total - tblk * TT, TT)

        def step(i, h):
            gi = gi_ref[0, i]                                     # (BB, 3Hp) f32
            # bf16 MXU inputs, f32 accumulation.
            gh = jnp.dot(h.astype(jnp.bfloat16), whh,
                         preferred_element_type=jnp.float32)      # (BB, 3Hp) f32
            # sigmoid(x) = 0.5*tanh(0.5*x) + 0.5  (1 EUP op instead of 2).
            r = 0.5 * jnp.tanh(0.5 * (gi[:, 0:Hp] + gh[:, 0:Hp])) + 0.5
            z = 0.5 * jnp.tanh(0.5 * (gi[:, Hp:2 * Hp] + gh[:, Hp:2 * Hp])) + 0.5
            n = jnp.tanh(gi[:, 2 * Hp:3 * Hp] + r * (gh[:, 2 * Hp:3 * Hp] + bhn))
            h_new = n + z * (h - n)                               # == (1-z)*n + z*h
            if has_remainder:
                # Padded (beyond-T) steps must not mutate h.
                h_new = jnp.where(i < valid, h_new, h)
            return h_new

        # TODO(synk): for tiny BB (latency-bound) interleave two batch
        # half-blocks per step to overlap MXU and EUP; drop the unroll factor
        # first (not BB) if vreg spills appear at large BB*Hp.
        h_ref[...] = lax.fori_loop(0, TT, step, h_ref[...], unroll=True)

    return kernel


def regression_rnn_forward(tokens, params, *, time_block=32, batch_block=None):
    """tokens: (B, T) int32. Returns score of shape (1, B, 1) like fc(hidden)."""
    emb = params["embedding"]          # (V, E)
    wih = params["w_ih_T"]             # (E, 3H)  (transposed PyTorch weight_ih_l0)
    whh = params["w_hh_T"]             # (H, 3H)
    bih = params["b_ih"]               # (1, 3H)
    bhh = params["b_hh"]               # (1, 3H)
    fcw = params["fc_w_T"]             # (H, 1)
    fcb = params["fc_b"]               # (1, 1)

    B, T = tokens.shape
    H = whh.shape[0]

    Hp = _round_up(H, 128)             # lane-align each gate block
    Bp = _round_up(B, 8)               # sublane-align the batch

    # Batch block: one block for small/medium batches (fewer grid steps on the
    # single-TC v5e/v6e); split in two once each half still feeds the MXU with
    # >=128 rows, so the "parallel" axis can occupy both v7x TensorCores.
    if batch_block is None:
        BB = Bp if Bp < 256 else _round_up(_cdiv(Bp, 2), 8)
    else:
        BB = _round_up(max(int(batch_block), 8), 8)
    Bp = _round_up(Bp, BB)             # grid covers every (padded) row
    nb = Bp // BB

    # Time block: as large as the VMEM budget allows (amortizes grid-step
    # overhead).  Keep the streamed gi double buffer under ~20 MiB so it fits
    # v7x's 64 MiB VMEM with room for weights/output; shrink TT, never BB.
    TT = max(1, min(time_block, T))
    while TT > 1 and 2 * TT * BB * 3 * Hp * 4 > (20 << 20):
        TT = _cdiv(TT, 2)
    nt = _cdiv(T, TT)
    Tpad = nt * TT

    # ---- Stage 1 (plain XLA): embedding gather (time-major) + one big
    #      input-projection GEMM over all timesteps (independent of h).
    x = jnp.take(emb, tokens.T, axis=0)                              # (T, B, E)
    # Fold b_hh into the r/z gate biases (they sit outside the r-gating);
    # the n-gate part of b_hh stays inside the recurrence.
    bias = bih + jnp.concatenate(
        [bhh[:, :2 * H], jnp.zeros((1, H), bhh.dtype)], axis=1)      # (1, 3H)
    gi = jnp.einsum("tbe,eg->tbg", x, wih) + bias                    # (T, B, 3H)

    # Pad each gate block H -> Hp, batch B -> Bp, time T -> Tpad (padded steps
    # are masked in-kernel), then make each batch block's time stream
    # contiguous in HBM: (nb, Tpad, BB, 3Hp).
    gi = gi.reshape(T, B, 3, H)
    gi = jnp.pad(gi, ((0, Tpad - T), (0, Bp - B), (0, 0), (0, Hp - H)))
    gi = gi.reshape(Tpad, nb, BB, 3 * Hp).transpose(1, 0, 2, 3)
    gi = gi.astype(jnp.float32)

    # Hidden weights in bf16 (MXU-native on v5e/v6e/v7x); accumulation stays f32.
    whh_p = jnp.pad(whh.reshape(H, 3, H),
                    ((0, Hp - H), (0, 0), (0, Hp - H))
                    ).reshape(Hp, 3 * Hp).astype(jnp.bfloat16)
    bhn_p = jnp.pad(bhh[:, 2 * H:3 * H],
                    ((0, 0), (0, Hp - H))).astype(jnp.float32)       # (1, Hp)

    # Explicit VMEM budget -> scoped limit (defaults are 16/32 MiB).
    vmem_bytes = (2 * TT * BB * 3 * Hp * 4      # gi double buffer (f32)
                  + 2 * Hp * 3 * Hp * 2         # W_hh^T (bf16, double-buffered)
                  + 2 * Hp * 4                  # b_hh(n)
                  + 2 * BB * Hp * 4)            # output / hidden carry
    vmem_limit = int(min(max(vmem_bytes + (4 << 20), 32 << 20), 56 << 20))

    kernel = _make_gru_kernel(T, TT, (T % TT) != 0)

    # ---- Stage 2 (Pallas): sequential recurrence, hidden matmul only.
    h_final = pl.pallas_call(
        kernel,
        out_shape=jax.ShapeDtypeStruct((Bp, Hp), jnp.float32),
        grid_spec=pltpu.PrefetchScalarGridSpec(
            num_scalar_prefetch=0,
            grid=(nb, nt),
            in_specs=[
                pl.BlockSpec((1, TT, BB, 3 * Hp), lambda b, t: (b, t, 0, 0)),
                pl.BlockSpec((Hp, 3 * Hp), lambda b, t: (0, 0)),
                pl.BlockSpec((1, Hp), lambda b, t: (0, 0)),
            ],
            out_specs=pl.BlockSpec((BB, Hp), lambda b, t: (b, 0)),
        ),
        compiler_params=pltpu.CompilerParams(
            # batch blocks are independent (v7x megacore); time is the recurrence.
            dimension_semantics=("parallel", "arbitrary"),
            vmem_limit_bytes=vmem_limit,
        ),
    )(gi, whh_p, bhn_p)

    # ---- Stage 3 (plain XLA): fc head on the final hidden state.
    h = h_final[:B, :H]                                              # (B, H)
    score = h @ fcw + fcb                                            # (B, 1)
    # Match PyTorch: hidden is (1, B, H) -> fc gives (1, B, 1)
    return score.reshape(1, B, 1)


def init_params(key, vocab_size, embed_size, hidden_size):
    ks = jax.random.split(key, 7)
    s = 0.1
    return {
        "embedding": s * jax.random.normal(ks[0], (vocab_size, embed_size), jnp.float32),
        "w_ih_T":    s * jax.random.normal(ks[1], (embed_size, 3 * hidden_size), jnp.float32),
        "w_hh_T":    s * jax.random.normal(ks[2], (hidden_size, 3 * hidden_size), jnp.float32),
        "b_ih":      s * jax.random.normal(ks[3], (1, 3 * hidden_size), jnp.float32),
        "b_hh":      s * jax.random.normal(ks[4], (1, 3 * hidden_size), jnp.float32),
        "fc_w_T":    s * jax.random.normal(ks[5], (hidden_size, 1), jnp.float32),
        "fc_b":      s * jax.random.normal(ks[6], (1, 1), jnp.float32),
    }


def reference_forward(tokens, params):
    """Pure-JAX f32 reference of the same GRU math for sanity checking."""
    emb = params["embedding"]
    x = jnp.take(emb, tokens, axis=0)            # (B, T, E)
    B, T, E = x.shape
    H = params["w_hh_T"].shape[0]
    h = jnp.zeros((B, H), jnp.float32)

    def step(h, x_t):
        gi = x_t @ params["w_ih_T"] + params["b_ih"]
        gh = h @ params["w_hh_T"] + params["b_hh"]
        i_r, i_z, i_n = gi[:, :H], gi[:, H:2 * H], gi[:, 2 * H:]
        h_r, h_z, h_n = gh[:, :H], gh[:, H:2 * H], gh[:, 2 * H:]
        r = jax.nn.sigmoid(i_r + h_r)
        z = jax.nn.sigmoid(i_z + h_z)
        n = jnp.tanh(i_n + r * h_n)
        return (1.0 - z) * n + z * h, None

    h, _ = jax.lax.scan(step, h, jnp.transpose(x, (1, 0, 2)))
    return (h @ params["fc_w_T"] + params["fc_b"]).reshape(1, B, 1)


if __name__ == "__main__":
    vocab_size, embed_size, hidden_size = 32, 16, 32
    B, T = 4, 8

    key = jax.random.PRNGKey(0)
    k_tok, k_par = jax.random.split(key)
    tokens = jax.random.randint(k_tok, (B, T), 0, vocab_size, dtype=jnp.int32)
    params = init_params(k_par, vocab_size, embed_size, hidden_size)

    score = regression_rnn_forward(tokens, params)
    score = jax.block_until_ready(score)

    ref = reference_forward(tokens, params)
    assert score.shape == (1, B, 1)
    # bf16 MXU inputs (f32 accumulation) -> slightly looser tolerance than f32.
    assert jnp.allclose(score, ref, atol=2e-2, rtol=1e-2), (score, ref)

    print("KERNEL_OK")
</pallas_src>

<mosaic_0001>
module attributes {stable_mosaic.version = 11 : i64} {
  func.func @kernel(%arg0: i32, %arg1: i32, %arg2: memref<1x8x8x384xf32, #tpu.memory_space<vmem>>, %arg3: memref<128x384xbf16, #tpu.memory_space<vmem>>, %arg4: memref<1x128xf32, #tpu.memory_space<vmem>>, %arg5: memref<8x128xf32, #tpu.memory_space<vmem>>) attributes {dimension_semantics = [#tpu.dimension_semantics<parallel>, #tpu.dimension_semantics<arbitrary>], iteration_bounds = array<i64: 1, 1>, scalar_prefetch = 0 : i64, scratch_operands = 0 : i64, tpu.core_type = #tpu.core_type<tc>, window_params = [{transform_indices = @transform_0, window_bounds = array<i64: 1, 8, 8, 384>}, {pipeline_mode = #tpu.pipeline_mode<synchronous>, transform_indices = @transform_1, window_bounds = array<i64: 128, 384>}, {pipeline_mode = #tpu.pipeline_mode<synchronous>, transform_indices = @transform_2, window_bounds = array<i64: 1, 128>}, {transform_indices = @transform_3, window_bounds = array<i64: 8, 128>}]} {
    %c0_i32 = arith.constant 0 : i32
    %0 = arith.cmpi eq, %arg1, %c0_i32 : i32
    %1 = arith.extui %0 : i1 to i32
    %c0_i32_0 = arith.constant 0 : i32
    %2 = arith.cmpi ne, %1, %c0_i32_0 : i32
    scf.if %2 {
      %cst_88 = arith.constant 0.000000e+00 : f32
      %281 = vector.broadcast %cst_88 : f32 to vector<8x128xf32>
      %c0_89 = arith.constant 0 : index
      %c0_90 = arith.constant 0 : index
      %282 = vector.load %arg5[%c0_89, %c0_90] : memref<8x128xf32, #tpu.memory_space<vmem>>, vector<8x128xf32>
      tpu.vector_store %arg5[%c0_89, %c0_90], %281 {strides = array<i32>} : memref<8x128xf32, #tpu.memory_space<vmem>>, vector<8x128xf32>,
    } else {
    }
    %c0 = arith.constant 0 : index
    %c0_1 = arith.constant 0 : index
    %3 = vector.load %arg3[%c0, %c0_1] : memref<128x384xbf16, #tpu.memory_space<vmem>>, vector<128x384xbf16>
    %c0_2 = arith.constant 0 : index
    %c0_3 = arith.constant 0 : index
    %4 = vector.load %arg4[%c0_2, %c0_3] : memref<1x128xf32, #tpu.memory_space<vmem>>, vector<1x128xf32>
    %5 = vector.shape_cast %4 : vector<1x128xf32> to vector<1x128xf32>
    %6 = vector.broadcast %5 : vector<1x128xf32> to vector<8x128xf32>
    %c0_4 = arith.constant 0 : index
    %c0_5 = arith.constant 0 : index
    %7 = vector.load %arg5[%c0_4, %c0_5] : memref<8x128xf32, #tpu.memory_space<vmem>>, vector<8x128xf32>
    %c0_i32_6 = arith.constant 0 : i32
    %c0_7 = arith.constant 0 : index
    %8 = arith.index_cast %c0_i32_6 : i32 to index
    %c0_8 = arith.constant 0 : index
    %c0_9 = arith.constant 0 : index
    %9 = vector.load %arg2[%c0_7, %8, %c0_8, %c0_9] : memref<1x8x8x384xf32, #tpu.memory_space<vmem>>, vector<1x1x8x384xf32>
    %10 = vector.shape_cast %9 : vector<1x1x8x384xf32> to vector<8x384xf32>
    %11 = arith.truncf %7 : vector<8x128xf32> to vector<8x128xbf16>
    %cst = arith.constant dense<0.000000e+00> : vector<8x384xf32>
    %12 = tpu.matmul %11, %3, %cst {dimension_numbers = #tpu.dot_dimension_numbers<[1], [0], [0], [1], [0, 0, 1, 1], [], []>} : vector<8x128xbf16>, vector<128x384xbf16>, vector<8x384xf32> -> vector<8x384xf32>
    %13 = vector.extract_strided_slice %10 {offsets = [0, 0], sizes = [8, 128], strides = [1, 1]} : vector<8x384xf32> to vector<8x128xf32>
    %14 = vector.extract_strided_slice %12 {offsets = [0, 0], sizes = [8, 128], strides = [1, 1]} : vector<8x384xf32> to vector<8x128xf32>
    %15 = arith.addf %13, %14 : vector<8x128xf32>
    %cst_10 = arith.constant 5.000000e-01 : f32
    %16 = vector.broadcast %cst_10 : f32 to vector<8x128xf32>
    %17 = arith.mulf %16, %15 : vector<8x128xf32>
    %18 = math.tanh %17 : vector<8x128xf32>
    %cst_11 = arith.constant 5.000000e-01 : f32
    %19 = vector.broadcast %cst_11 : f32 to vector<8x128xf32>
    %20 = arith.mulf %19, %18 : vector<8x128xf32>
    %cst_12 = arith.constant 5.000000e-01 : f32
    %21 = vector.broadcast %cst_12 : f32 to vector<8x128xf32>
    %22 = arith.addf %20, %21 : vector<8x128xf32>
    %23 = vector.extract_strided_slice %10 {offsets = [0, 128], sizes = [8, 128], strides = [1, 1]} : vector<8x384xf32> to vector<8x128xf32>
    %24 = vector.extract_strided_slice %12 {offsets = [0, 128], sizes = [8, 128], strides = [1, 1]} : vector<8x384xf32> to vector<8x128xf32>
    %25 = arith.addf %23, %24 : vector<8x128xf32>
    %cst_13 = arith.constant 5.000000e-01 : f32
    %26 = vector.broadcast %cst_13 : f32 to vector<8x128xf32>
    %27 = arith.mulf %26, %25 : vector<8x128xf32>
    %28 = math.tanh %27 : vector<8x128xf32>
    %cst_14 = arith.constant 5.000000e-01 : f32
    %29 = vector.broadcast %cst_14 : f32 to vector<8x128xf32>
    %30 = arith.mulf %29, %28 : vector<8x128xf32>
    %cst_15 = arith.constant 5.000000e-01 : f32
    %31 = vector.broadcast %cst_15 : f32 to vector<8x128xf32>
    %32 = arith.addf %30, %31 : vector<8x128xf32>
    %33 = vector.extract_strided_slice %10 {offsets = [0, 256], sizes = [8, 128], strides = [1, 1]} : vector<8x384xf32> to vector<8x128xf32>
    %34 = vector.extract_strided_slice %12 {offsets = [0, 256], sizes = [8, 128], strides = [1, 1]} : vector<8x384xf32> to vector<8x128xf32>
    %35 = arith.addf %34, %6 : vector<8x128xf32>
    %36 = arith.mulf %22, %35 : vector<8x128xf32>
    %37 = arith.addf %33, %36 : vector<8x128xf32>
    %38 = math.tanh %37 : vector<8x128xf32>
    %39 = arith.subf %7, %38 : vector<8x128xf32>
    %40 = arith.mulf %32, %39 : vector<8x128xf32>
    %41 = arith.addf %38, %40 : vector<8x128xf32>
    %c1_i32 = arith.constant 1 : i32
    %c0_16 = arith.constant 0 : index
    %42 = arith.index_cast %c1_i32 : i32 to index
    %c0_17 = arith.constant 0 : index
    %c0_18 = arith.constant 0 : index
    %43 = vector.load %arg2[%c0_16, %42, %c0_17, %c0_18] : memref<1x8x8x384xf32, #tpu.memory_space<vmem>>, vector<1x1x8x384xf32>
    %44 = vector.shape_cast %43 : vector<1x1x8x384xf32> to vector<8x384xf32>
    %45 = arith.truncf %41 : vector<8x128xf32> to vector<8x128xbf16>
    %cst_19 = arith.constant dense<0.000000e+00> : vector<8x384xf32>
    %46 = tpu.matmul %45, %3, %cst_19 {dimension_numbers = #tpu.dot_dimension_numbers<[1], [0], [0], [1], [0, 0, 1, 1], [], []>} : vector<8x128xbf16>, vector<128x384xbf16>, vector<8x384xf32> -> vector<8x384xf32>
    %47 = vector.extract_strided_slice %44 {offsets = [0, 0], sizes = [8, 128], strides = [1, 1]} : vector<8x384xf32> to vector<8x128xf32>
    %48 = vector.extract_strided_slice %46 {offsets = [0, 0], sizes = [8, 128], strides = [1, 1]} : vector<8x384xf32> to vector<8x128xf32>
    %49 = arith.addf %47, %48 : vector<8x128xf32>
    %cst_20 = arith.constant 5.000000e-01 : f32
    %50 = vector.broadcast %cst_20 : f32 to vector<8x128xf32>
    %51 = arith.mulf %50, %49 : vector<8x128xf32>
    %52 = math.tanh %51 : vector<8x128xf32>
    %cst_21 = arith.constant 5.000000e-01 : f32
    %53 = vector.broadcast %cst_21 : f32 to vector<8x128xf32>
    %54 = arith.mulf %53, %52 : vector<8x128xf32>
    %cst_22 = arith.constant 5.000000e-01 : f32
    %55 = vector.broadcast %cst_22 : f32 to vector<8x128xf32>
    %56 = arith.addf %54, %55 : vector<8x128xf32>
    %57 = vector.extract_strided_slice %44 {offsets = [0, 128], sizes = [8, 128], strides = [1, 1]} : vector<8x384xf32> to vector<8x128xf32>
    %58 = vector.extract_strided_slice %46 {offsets = [0, 128], sizes = [8, 128], strides = [1, 1]} : vector<8x384xf32> to vector<8x128xf32>
    %59 = arith.addf %57, %58 : vector<8x128xf32>
    %cst_23 = arith.constant 5.000000e-01 : f32
    %60 = vector.broadcast %cst_23 : f32 to vector<8x128xf32>
    %61 = arith.mulf %60, %59 : vector<8x128xf32>
    %62 = math.tanh %61 : vector<8x128xf32>
    %cst_24 = arith.constant 5.000000e-01 : f32
    %63 = vector.broadcast %cst_24 : f32 to vector<8x128xf32>
    %64 = arith.mulf %63, %62 : vector<8x128xf32>
    %cst_25 = arith.constant 5.000000e-01 : f32
    %65 = vector.broadcast %cst_25 : f32 to vector<8x128xf32>
    %66 = arith.addf %64, %65 : vector<8x128xf32>
    %67 = vector.extract_strided_slice %44 {offsets = [0, 256], sizes = [8, 128], strides = [1, 1]} : vector<8x384xf32> to vector<8x128xf32>
    %68 = vector.extract_strided_slice %46 {offsets = [0, 256], sizes = [8, 128], strides = [1, 1]} : vector<8x384xf32> to vector<8x128xf32>
    %69 = arith.addf %68, %6 : vector<8x128xf32>
    %70 = arith.mulf %56, %69 : vector<8x128xf32>
    %71 = arith.addf %67, %70 : vector<8x128xf32>
    %72 = math.tanh %71 : vector<8x128xf32>
    %73 = arith.subf %41, %72 : vector<8x128xf32>
    %74 = arith.mulf %66, %73 : vector<8x128xf32>
    %75 = arith.addf %72, %74 : vector<8x128xf32>
    %c2_i32 = arith.constant 2 : i32
    %c0_26 = arith.constant 0 : index
    %76 = arith.index_cast %c2_i32 : i32 to index
    %c0_27 = arith.constant 0 : index
    %c0_28 = arith.constant 0 : index
    %77 = vector.load %arg2[%c0_26, %76, %c0_27, %c0_28] : memref<1x8x8x384xf32, #tpu.memory_space<vmem>>, vector<1x1x8x384xf32>
    %78 = vector.shape_cast %77 : vector<1x1x8x384xf32> to vector<8x384xf32>
    %79 = arith.truncf %75 : vector<8x128xf32> to vector<8x128xbf16>
    %cst_29 = arith.constant dense<0.000000e+00> : vector<8x384xf32>
    %80 = tpu.matmul %79, %3, %cst_29 {dimension_numbers = #tpu.dot_dimension_numbers<[1], [0], [0], [1], [0, 0, 1, 1], [], []>} : vector<8x128xbf16>, vector<128x384xbf16>, vector<8x384xf32> -> vector<8x384xf32>
    %81 = vector.extract_strided_slice %78 {offsets = [0, 0], sizes = [8, 128], strides = [1, 1]} : vector<8x384xf32> to vector<8x128xf32>
    %82 = vector.extract_strided_slice %80 {offsets = [0, 0], sizes = [8, 128], strides = [1, 1]} : vector<8x384xf32> to vector<8x128xf32>
    %83 = arith.addf %81, %82 : vector<8x128xf32>
    %cst_30 = arith.constant 5.000000e-01 : f32
    %84 = vector.broadcast %cst_30 : f32 to vector<8x128xf32>
    %85 = arith.mulf %84, %83 : vector<8x128xf32>
    %86 = math.tanh %85 : vector<8x128xf32>
    %cst_31 = arith.constant 5.000000e-01 : f32
    %87 = vector.broadcast %cst_31 : f32 to vector<8x128xf32>
    %88 = arith.mulf %87, %86 : vector<8x128xf32>
    %cst_32 = arith.constant 5.000000e-01 : f32
    %89 = vector.broadcast %cst_32 : f32 to vector<8x128xf32>
    %90 = arith.addf %88, %89 : vector<8x128xf32>
    %91 = vector.extract_strided_slice %78 {offsets = [0, 128], sizes = [8, 128], strides = [1, 1]} : vector<8x384xf32> to vector<8x128xf32>
    %92 = vector.extract_strided_slice %80 {offsets = [0, 128], sizes = [8, 128], strides = [1, 1]} : vector<8x384xf32> to vector<8x128xf32>
    %93 = arith.addf %91, %92 : vector<8x128xf32>
    %cst_33 = arith.constant 5.000000e-01 : f32
    %94 = vector.broadcast %cst_33 : f32 to vector<8x128xf32>
    %95 = arith.mulf %94, %93 : vector<8x128xf32>
    %96 = math.tanh %95 : vector<8x128xf32>
    %cst_34 = arith.constant 5.000000e-01 : f32
    %97 = vector.broadcast %cst_34 : f32 to vector<8x128xf32>
    %98 = arith.mulf %97, %96 : vector<8x128xf32>
    %cst_35 = arith.constant 5.000000e-01 : f32
    %99 = vector.broadcast %cst_35 : f32 to vector<8x128xf32>
    %100 = arith.addf %98, %99 : vector<8x128xf32>
    %101 = vector.extract_strided_slice %78 {offsets = [0, 256], sizes = [8, 128], strides = [1, 1]} : vector<8x384xf32> to vector<8x128xf32>
    %102 = vector.extract_strided_slice %80 {offsets = [0, 256], sizes = [8, 128], strides = [1, 1]} : vector<8x384xf32> to vector<8x128xf32>
    %103 = arith.addf %102, %6 : vector<8x128xf32>
    %104 = arith.mulf %90, %103 : vector<8x128xf32>
    %105 = arith.addf %101, %104 : vector<8x128xf32>
    %106 = math.tanh %105 : vector<8x128xf32>
    %107 = arith.subf %75, %106 : vector<8x128xf32>
    %108 = arith.mulf %100, %107 : vector<8x128xf32>
    %109 = arith.addf %106, %108 : vector<8x128xf32>
    %c3_i32 = arith.constant 3 : i32
    %c0_36 = arith.constant 0 : index
    %110 = arith.index_cast %c3_i32 : i32 to index
    %c0_37 = arith.constant 0 : index
    %c0_38 = arith.constant 0 : index
    %111 = vector.load %arg2[%c0_36, %110, %c0_37, %c0_38] : memref<1x8x8x384xf32, #tpu.memory_space<vmem>>, vector<1x1x8x384xf32>
    %112 = vector.shape_cast %111 : vector<1x1x8x384xf32> to vector<8x384xf32>
    %113 = arith.truncf %109 : vector<8x128xf32> to vector<8x128xbf16>
    %cst_39 = arith.constant dense<0.000000e+00> : vector<8x384xf32>
    %114 = tpu.matmul %113, %3, %cst_39 {dimension_numbers = #tpu.dot_dimension_numbers<[1], [0], [0], [1], [0, 0, 1, 1], [], []>} : vector<8x128xbf16>, vector<128x384xbf16>, vector<8x384xf32> -> vector<8x384xf32>
    %115 = vector.extract_strided_slice %112 {offsets = [0, 0], sizes = [8, 128], strides = [1, 1]} : vector<8x384xf32> to vector<8x128xf32>
    %116 = vector.extract_strided_slice %114 {offsets = [0, 0], sizes = [8, 128], strides = [1, 1]} : vector<8x384xf32> to vector<8x128xf32>
    %117 = arith.addf %115, %116 : vector<8x128xf32>
    %cst_40 = arith.constant 5.000000e-01 : f32
    %118 = vector.broadcast %cst_40 : f32 to vector<8x128xf32>
    %119 = arith.mulf %118, %117 : vector<8x128xf32>
    %120 = math.tanh %119 : vector<8x128xf32>
    %cst_41 = arith.constant 5.000000e-01 : f32
    %121 = vector.broadcast %cst_41 : f32 to vector<8x128xf32>
    %122 = arith.mulf %121, %120 : vector<8x128xf32>
    %cst_42 = arith.constant 5.000000e-01 : f32
    %123 = vector.broadcast %cst_42 : f32 to vector<8x128xf32>
    %124 = arith.addf %122, %123 : vector<8x128xf32>
    %125 = vector.extract_strided_slice %112 {offsets = [0, 128], sizes = [8, 128], strides = [1, 1]} : vector<8x384xf32> to vector<8x128xf32>
    %126 = vector.extract_strided_slice %114 {offsets = [0, 128], sizes = [8, 128], strides = [1, 1]} : vector<8x384xf32> to vector<8x128xf32>
    %127 = arith.addf %125, %126 : vector<8x128xf32>
    %cst_43 = arith.constant 5.000000e-01 : f32
    %128 = vector.broadcast %cst_43 : f32 to vector<8x128xf32>
    %129 = arith.mulf %128, %127 : vector<8x128xf32>
    %130 = math.tanh %129 : vector<8x128xf32>
    %cst_44 = arith.constant 5.000000e-01 : f32
    %131 = vector.broadcast %cst_44 : f32 to vector<8x128xf32>
    %132 = arith.mulf %131, %130 : vector<8x128xf32>
    %cst_45 = arith.constant 5.000000e-01 : f32
    %133 = vector.broadcast %cst_45 : f32 to vector<8x128xf32>
    %134 = arith.addf %132, %133 : vector<8x128xf32>
    %135 = vector.extract_strided_slice %112 {offsets = [0, 256], sizes = [8, 128], strides = [1, 1]} : vector<8x384xf32> to vector<8x128xf32>
    %136 = vector.extract_strided_slice %114 {offsets = [0, 256], sizes = [8, 128], strides = [1, 1]} : vector<8x384xf32> to vector<8x128xf32>
    %137 = arith.addf %136, %6 : vector<8x128xf32>
    %138 = arith.mulf %124, %137 : vector<8x128xf32>
    %139 = arith.addf %135, %138 : vector<8x128xf32>
    %140 = math.tanh %139 : vector<8x128xf32>
    %141 = arith.subf %109, %140 : vector<8x128xf32>
    %142 = arith.mulf %134, %141 : vector<8x128xf32>
    %143 = arith.addf %140, %142 : vector<8x128xf32>
    %c4_i32 = arith.constant 4 : i32
    %c0_46 = arith.constant 0 : index
    %144 = arith.index_cast %c4_i32 : i32 to index
    %c0_47 = arith.constant 0 : index
    %c0_48 = arith.constant 0 : index
    %145 = vector.load %arg2[%c0_46, %144, %c0_47, %c0_48] : memref<1x8x8x384xf32, #tpu.memory_space<vmem>>, vector<1x1x8x384xf32>
    %146 = vector.shape_cast %145 : vector<1x1x8x384xf32> to vector<8x384xf32>
    %147 = arith.truncf %143 : vector<8x128xf32> to vector<8x128xbf16>
    %cst_49 = arith.constant dense<0.000000e+00> : vector<8x384xf32>
    %148 = tpu.matmul %147, %3, %cst_49 {dimension_numbers = #tpu.dot_dimension_numbers<[1], [0], [0], [1], [0, 0, 1, 1], [], []>} : vector<8x128xbf16>, vector<128x384xbf16>, vector<8x384xf32> -> vector<8x384xf32>
    %149 = vector.extract_strided_slice %146 {offsets = [0, 0], sizes = [8, 128], strides = [1, 1]} : vector<8x384xf32> to vector<8x128xf32>
    %150 = vector.extract_strided_slice %148 {offsets = [0, 0], sizes = [8, 128], strides = [1, 1]} : vector<8x384xf32> to vector<8x128xf32>
    %151 = arith.addf %149, %150 : vector<8x128xf32>
    %cst_50 = arith.constant 5.000000e-01 : f32
    %152 = vector.broadcast %cst_50 : f32 to vector<8x128xf32>
    %153 = arith.mulf %152, %151 : vector<8x128xf32>
    %154 = math.tanh %153 : vector<8x128xf32>
    %cst_51 = arith.constant 5.000000e-01 : f32
    %155 = vector.broadcast %cst_51 : f32 to vector<8x128xf32>
    %156 = arith.mulf %155, %154 : vector<8x128xf32>
    %cst_52 = arith.constant 5.000000e-01 : f32
    %157 = vector.broadcast %cst_52 : f32 to vector<8x128xf32>
    %158 = arith.addf %156, %157 : vector<8x128xf32>
    %159 = vector.extract_strided_slice %146 {offsets = [0, 128], sizes = [8, 128], strides = [1, 1]} : vector<8x384xf32> to vector<8x128xf32>
    %160 = vector.extract_strided_slice %148 {offsets = [0, 128], sizes = [8, 128], strides = [1, 1]} : vector<8x384xf32> to vector<8x128xf32>
    %161 = arith.addf %159, %160 : vector<8x128xf32>
    %cst_53 = arith.constant 5.000000e-01 : f32
    %162 = vector.broadcast %cst_53 : f32 to vector<8x128xf32>
    %163 = arith.mulf %162, %161 : vector<8x128xf32>
    %164 = math.tanh %163 : vector<8x128xf32>
    %cst_54 = arith.constant 5.000000e-01 : f32
    %165 = vector.broadcast %cst_54 : f32 to vector<8x128xf32>
    %166 = arith.mulf %165, %164 : vector<8x128xf32>
    %cst_55 = arith.constant 5.000000e-01 : f32
    %167 = vector.broadcast %cst_55 : f32 to vector<8x128xf32>
    %168 = arith.addf %166, %167 : vector<8x128xf32>
    %169 = vector.extract_strided_slice %146 {offsets = [0, 256], sizes = [8, 128], strides = [1, 1]} : vector<8x384xf32> to vector<8x128xf32>
    %170 = vector.extract_strided_slice %148 {offsets = [0, 256], sizes = [8, 128], strides = [1, 1]} : vector<8x384xf32> to vector<8x128xf32>
    %171 = arith.addf %170, %6 : vector<8x128xf32>
    %172 = arith.mulf %158, %171 : vector<8x128xf32>
    %173 = arith.addf %169, %172 : vector<8x128xf32>
    %174 = math.tanh %173 : vector<8x128xf32>
    %175 = arith.subf %143, %174 : vector<8x128xf32>
    %176 = arith.mulf %168, %175 : vector<8x128xf32>
    %177 = arith.addf %174, %176 : vector<8x128xf32>
    %c5_i32 = arith.constant 5 : i32
    %c0_56 = arith.constant 0 : index
    %178 = arith.index_cast %c5_i32 : i32 to index
    %c0_57 = arith.constant 0 : index
    %c0_58 = arith.constant 0 : index
    %179 = vector.load %arg2[%c0_56, %178, %c0_57, %c0_58] : memref<1x8x8x384xf32, #tpu.memory_space<vmem>>, vector<1x1x8x384xf32>
    %180 = vector.shape_cast %179 : vector<1x1x8x384xf32> to vector<8x384xf32>
    %181 = arith.truncf %177 : vector<8x128xf32> to vector<8x128xbf16>
    %cst_59 = arith.constant dense<0.000000e+00> : vector<8x384xf32>
    %182 = tpu.matmul %181, %3, %cst_59 {dimension_numbers = #tpu.dot_dimension_numbers<[1], [0], [0], [1], [0, 0, 1, 1], [], []>} : vector<8x128xbf16>, vector<128x384xbf16>, vector<8x384xf32> -> vector<8x384xf32>
    %183 = vector.extract_strided_slice %180 {offsets = [0, 0], sizes = [8, 128], strides = [1, 1]} : vector<8x384xf32> to vector<8x128xf32>
    %184 = vector.extract_strided_slice %182 {offsets = [0, 0], sizes = [8, 128], strides = [1, 1]} : vector<8x384xf32> to vector<8x128xf32>
    %185 = arith.addf %183, %184 : vector<8x128xf32>
    %cst_60 = arith.constant 5.000000e-01 : f32
    %186 = vector.broadcast %cst_60 : f32 to vector<8x128xf32>
    %187 = arith.mulf %186, %185 : vector<8x128xf32>
    %188 = math.tanh %187 : vector<8x128xf32>
    %cst_61 = arith.constant 5.000000e-01 : f32
    %189 = vector.broadcast %cst_61 : f32 to vector<8x128xf32>
    %190 = arith.mulf %189, %188 : vector<8x128xf32>
    %cst_62 = arith.constant 5.000000e-01 : f32
    %191 = vector.broadcast %cst_62 : f32 to vector<8x128xf32>
    %192 = arith.addf %190, %191 : vector<8x128xf32>
    %193 = vector.extract_strided_slice %180 {offsets = [0, 128], sizes = [8, 128], strides = [1, 1]} : vector<8x384xf32> to vector<8x128xf32>
    %194 = vector.extract_strided_slice %182 {offsets = [0, 128], sizes = [8, 128], strides = [1, 1]} : vector<8x384xf32> to vector<8x128xf32>
    %195 = arith.addf %193, %194 : vector<8x128xf32>
    %cst_63 = arith.constant 5.000000e-01 : f32
    %196 = vector.broadcast %cst_63 : f32 to vector<8x128xf32>
    %197 = arith.mulf %196, %195 : vector<8x128xf32>
    %198 = math.tanh %197 : vector<8x128xf32>
    %cst_64 = arith.constant 5.000000e-01 : f32
    %199 = vector.broadcast %cst_64 : f32 to vector<8x128xf32>
    %200 = arith.mulf %199, %198 : vector<8x128xf32>
    %cst_65 = arith.constant 5.000000e-01 : f32
    %201 = vector.broadcast %cst_65 : f32 to vector<8x128xf32>
    %202 = arith.addf %200, %201 : vector<8x128xf32>
    %203 = vector.extract_strided_slice %180 {offsets = [0, 256], sizes = [8, 128], strides = [1, 1]} : vector<8x384xf32> to vector<8x128xf32>
    %204 = vector.extract_strided_slice %182 {offsets = [0, 256], sizes = [8, 128], strides = [1, 1]} : vector<8x384xf32> to vector<8x128xf32>
    %205 = arith.addf %204, %6 : vector<8x128xf32>
    %206 = arith.mulf %192, %205 : vector<8x128xf32>
    %207 = arith.addf %203, %206 : vector<8x128xf32>
    %208 = math.tanh %207 : vector<8x128xf32>
    %209 = arith.subf %177, %208 : vector<8x128xf32>
    %210 = arith.mulf %202, %209 : vector<8x128xf32>
    %211 = arith.addf %208, %210 : vector<8x128xf32>
    %c6_i32 = arith.constant 6 : i32
    %c0_66 = arith.constant 0 : index
    %212 = arith.index_cast %c6_i32 : i32 to index
    %c0_67 = arith.constant 0 : index
    %c0_68 = arith.constant 0 : index
    %213 = vector.load %arg2[%c0_66, %212, %c0_67, %c0_68] : memref<1x8x8x384xf32, #tpu.memory_space<vmem>>, vector<1x1x8x384xf32>
    %214 = vector.shape_cast %213 : vector<1x1x8x384xf32> to vector<8x384xf32>
    %215 = arith.truncf %211 : vector<8x128xf32> to vector<8x128xbf16>
    %cst_69 = arith.constant dense<0.000000e+00> : vector<8x384xf32>
    %216 = tpu.matmul %215, %3, %cst_69 {dimension_numbers = #tpu.dot_dimension_numbers<[1], [0], [0], [1], [0, 0, 1, 1], [], []>} : vector<8x128xbf16>, vector<128x384xbf16>, vector<8x384xf32> -> vector<8x384xf32>
    %217 = vector.extract_strided_slice %214 {offsets = [0, 0], sizes = [8, 128], strides = [1, 1]} : vector<8x384xf32> to vector<8x128xf32>
    %218 = vector.extract_strided_slice %216 {offsets = [0, 0], sizes = [8, 128], strides = [1, 1]} : vector<8x384xf32> to vector<8x128xf32>
    %219 = arith.addf %217, %218 : vector<8x128xf32>
    %cst_70 = arith.constant 5.000000e-01 : f32
    %220 = vector.broadcast %cst_70 : f32 to vector<8x128xf32>
    %221 = arith.mulf %220, %219 : vector<8x128xf32>
    %222 = math.tanh %221 : vector<8x128xf32>
    %cst_71 = arith.constant 5.000000e-01 : f32
    %223 = vector.broadcast %cst_71 : f32 to vector<8x128xf32>
    %224 = arith.mulf %223, %222 : vector<8x128xf32>
    %cst_72 = arith.constant 5.000000e-01 : f32
    %225 = vector.broadcast %cst_72 : f32 to vector<8x128xf32>
    %226 = arith.addf %224, %225 : vector<8x128xf32>
    %227 = vector.extract_strided_slice %214 {offsets = [0, 128], sizes = [8, 128], strides = [1, 1]} : vector<8x384xf32> to vector<8x128xf32>
    %228 = vector.extract_strided_slice %216 {offsets = [0, 128], sizes = [8, 128], strides = [1, 1]} : vector<8x384xf32> to vector<8x128xf32>
    %229 = arith.addf %227, %228 : vector<8x128xf32>
    %cst_73 = arith.constant 5.000000e-01 : f32
    %230 = vector.broadcast %cst_73 : f32 to vector<8x128xf32>
    %231 = arith.mulf %230, %229 : vector<8x128xf32>
    %232 = math.tanh %231 : vector<8x128xf32>
    %cst_74 = arith.constant 5.000000e-01 : f32
    %233 = vector.broadcast %cst_74 : f32 to vector<8x128xf32>
    %234 = arith.mulf %233, %232 : vector<8x128xf32>
    %cst_75 = arith.constant 5.000000e-01 : f32
    %235 = vector.broadcast %cst_75 : f32 to vector<8x128xf32>
    %236 = arith.addf %234, %235 : vector<8x128xf32>
    %237 = vector.extract_strided_slice %214 {offsets = [0, 256], sizes = [8, 128], strides = [1, 1]} : vector<8x384xf32> to vector<8x128xf32>
    %238 = vector.extract_strided_slice %216 {offsets = [0, 256], sizes = [8, 128], strides = [1, 1]} : vector<8x384xf32> to vector<8x128xf32>
    %239 = arith.addf %238, %6 : vector<8x128xf32>
    %240 = arith.mulf %226, %239 : vector<8x128xf32>
    %241 = arith.addf %237, %240 : vector<8x128xf32>
    %242 = math.tanh %241 : vector<8x128xf32>
    %243 = arith.subf %211, %242 : vector<8x128xf32>
    %244 = arith.mulf %236, %243 : vector<8x128xf32>
    %245 = arith.addf %242, %244 : vector<8x128xf32>
    %c7_i32 = arith.constant 7 : i32
    %c0_76 = arith.constant 0 : index
    %246 = arith.index_cast %c7_i32 : i32 to index
    %c0_77 = arith.constant 0 : index
    %c0_78 = arith.constant 0 : index
    %247 = vector.load %arg2[%c0_76, %246, %c0_77, %c0_78] : memref<1x8x8x384xf32, #tpu.memory_space<vmem>>, vector<1x1x8x384xf32>
    %248 = vector.shape_cast %247 : vector<1x1x8x384xf32> to vector<8x384xf32>
    %249 = arith.truncf %245 : vector<8x128xf32> to vector<8x128xbf16>
    %cst_79 = arith.constant dense<0.000000e+00> : vector<8x384xf32>
    %250 = tpu.matmul %249, %3, %cst_79 {dimension_numbers = #tpu.dot_dimension_numbers<[1], [0], [0], [1], [0, 0, 1, 1], [], []>} : vector<8x128xbf16>, vector<128x384xbf16>, vector<8x384xf32> -> vector<8x384xf32>
    %251 = vector.extract_strided_slice %248 {offsets = [0, 0], sizes = [8, 128], strides = [1, 1]} : vector<8x384xf32> to vector<8x128xf32>
    %252 = vector.extract_strided_slice %250 {offsets = [0, 0], sizes = [8, 128], strides = [1, 1]} : vector<8x384xf32> to vector<8x128xf32>
    %253 = arith.addf %251, %252 : vector<8x128xf32>
    %cst_80 = arith.constant 5.000000e-01 : f32
    %254 = vector.broadcast %cst_80 : f32 to vector<8x128xf32>
    %255 = arith.mulf %254, %253 : vector<8x128xf32>
    %256 = math.tanh %255 : vector<8x128xf32>
    %cst_81 = arith.constant 5.000000e-01 : f32
    %257 = vector.broadcast %cst_81 : f32 to vector<8x128xf32>
    %258 = arith.mulf %257, %256 : vector<8x128xf32>
    %cst_82 = arith.constant 5.000000e-01 : f32
    %259 = vector.broadcast %cst_82 : f32 to vector<8x128xf32>
    %260 = arith.addf %258, %259 : vector<8x128xf32>
    %261 = vector.extract_strided_slice %248 {offsets = [0, 128], sizes = [8, 128], strides = [1, 1]} : vector<8x384xf32> to vector<8x128xf32>
    %262 = vector.extract_strided_slice %250 {offsets = [0, 128], sizes = [8, 128], strides = [1, 1]} : vector<8x384xf32> to vector<8x128xf32>
    %263 = arith.addf %261, %262 : vector<8x128xf32>
    %cst_83 = arith.constant 5.000000e-01 : f32
    %264 = vector.broadcast %cst_83 : f32 to vector<8x128xf32>
    %265 = arith.mulf %264, %263 : vector<8x128xf32>
    %266 = math.tanh %265 : vector<8x128xf32>
    %cst_84 = arith.constant 5.000000e-01 : f32
    %267 = vector.broadcast %cst_84 : f32 to vector<8x128xf32>
    %268 = arith.mulf %267, %266 : vector<8x128xf32>
    %cst_85 = arith.constant 5.000000e-01 : f32
    %269 = vector.broadcast %cst_85 : f32 to vector<8x128xf32>
    %270 = arith.addf %268, %269 : vector<8x128xf32>
    %271 = vector.extract_strided_slice %248 {offsets = [0, 256], sizes = [8, 128], strides = [1, 1]} : vector<8x384xf32> to vector<8x128xf32>
    %272 = vector.extract_strided_slice %250 {offsets = [0, 256], sizes = [8, 128], strides = [1, 1]} : vector<8x384xf32> to vector<8x128xf32>
    %273 = arith.addf %272, %6 : vector<8x128xf32>
    %274 = arith.mulf %260, %273 : vector<8x128xf32>
    %275 = arith.addf %271, %274 : vector<8x128xf32>
    %276 = math.tanh %275 : vector<8x128xf32>
    %277 = arith.subf %245, %276 : vector<8x128xf32>
    %278 = arith.mulf %270, %277 : vector<8x128xf32>
    %279 = arith.addf %276, %278 : vector<8x128xf32>
    %c8_i32 = arith.constant 8 : i32
    %c0_86 = arith.constant 0 : index
    %c0_87 = arith.constant 0 : index
    %280 = vector.load %arg5[%c0_86, %c0_87] : memref<8x128xf32, #tpu.memory_space<vmem>>, vector<8x128xf32>
    tpu.vector_store %arg5[%c0_86, %c0_87], %279 {strides = array<i32>} : memref<8x128xf32, #tpu.memory_space<vmem>>, vector<8x128xf32>,
    return
  }
  func.func @transform_0(%arg0: i32, %arg1: i32) -> (i32, i32, i32, i32) {
    %c0_i32 = arith.constant 0 : i32
    %c0_i32_0 = arith.constant 0 : i32
    %c0_i32_1 = arith.constant 0 : i32
    return %arg0, %arg1, %c0_i32, %c0_i32_0 : i32, i32, i32, i32
  }
  func.func @transform_1(%arg0: i32, %arg1: i32) -> (i32, i32) {
    %c0_i32 = arith.constant 0 : i32
    %c0_i32_0 = arith.constant 0 : i32
    %c0_i32_1 = arith.constant 0 : i32
    return %c0_i32, %c0_i32_0 : i32, i32
  }
  func.func @transform_2(%arg0: i32, %arg1: i32) -> (i32, i32) {
    %c0_i32 = arith.constant 0 : i32
    %c0_i32_0 = arith.constant 0 : i32
    %c0_i32_1 = arith.constant 0 : i32
    return %c0_i32, %c0_i32_0 : i32, i32
  }
  func.func @transform_3(%arg0: i32, %arg1: i32) -> (i32, i32) {
    %c0_i32 = arith.constant 0 : i32
    %c0_i32_0 = arith.constant 0 : i32
    return %arg0, %c0_i32 : i32, i32
  }
}

</mosaic_0001>

<bundles_post_ra>
// kernel: tpu_custom_call.1
= control target key start
LH: loop header
LB: loop body
LE: loop exit
PB: predicated region body
PF: predicated region fallthrough
CT: control target
= control target key end

     0   :  { %8 = vsyncpa [#allocation3], 0  ;;  %s1881_s0 = inlined_call_operand.hbm [shape: f32[1,8,8,384], index: 0, kind: input, shape index: {}]   ;;  %s1882_s1 = inlined_call_operand.hbm [shape: bf16[128,384], index: 1, kind: input, shape index: {}]   ;;  %s1883_s2 = inlined_call_operand.vmem [shape: f32[1,128], index: 2, kind: input, shape index: {}]   ;;  %s1884_s3 = inlined_call_operand.hbm [shape: f32[8,128], index: 3, kind: output, shape index: {}]  }
   0x1   :  { %9 = vsyncpa [#allocation6], 0 }
   0x2   :  { %10 = vsyncpa [#allocation4], 0  ;;  %s1470_s12 = smov [#allocation2]  }
   0x3   :  { %s16_s13 = sshll.u32 %s1470_s12, 4  ;;  %s17_s13 = int_to_ptr.vmem [resolvable:$true] %s16_s13 }
   0x4   :  { %s1412_s14 = scalar_lea.vmem %s17_s13, 3072  ;;  %p1417_p1 = scmp.lt.s32.totalorder %s17_s13, %s17_s13 }
   0x5   :  { %p1413_p0 = scmp.ne.s32.totalorder %s17_s13, %s1412_s14  ;;  %p1418_p2 = scmp.lt.s32.totalorder %s1412_s14, %s1412_s14 }
   0x7   :  { %p1419_p3 = por %p1418_p2, %p1417_p1 }
   0x9   :  { %p1420_p4 = pnand %p1419_p3, %p1413_p0 }
   0xb   :  { %1423 = shalt.err (!%p1420_p4)
}
   0xc   :  { %s1471_s15 = smov 384   ;;  %s1472_s16 = smov 24  }
   0xd   :  { %22 = dma.hbm_to_vmem [thread:$0]  %s1881_s0, 3072, %s17_s13, [#allocation3], %s1471_s15, %s1471_s15, %s1472_s16  }
   0xe   :  { %s1473_s19 = smov [#allocation5]  }
   0xf   :  { %s28_s20 = sshll.u32 %s1473_s19, 4  ;;  %s29_s20 = int_to_ptr.vmem [resolvable:$true] %s28_s20 }
  0x10   :  { %s1432_s21 = scalar_lea.vmem %s29_s20, 3072  ;;  %p1437_p6 = scmp.lt.s32.totalorder %s29_s20, %s29_s20 }
  0x11   :  { %p1433_p5 = scmp.ne.s32.totalorder %s29_s20, %s1432_s21  ;;  %p1438_p7 = scmp.lt.s32.totalorder %s1432_s21, %s1432_s21 }
  0x13   :  { %p1439_p8 = por %p1438_p7, %p1437_p6 }
  0x15   :  { %p1440_p9 = pnand %p1439_p8, %p1433_p5 }
  0x17   :  { %1443 = shalt.err (!%p1440_p9)
}
  0x18   :  { %s1474_s22 = smov 192   ;;  %s1475_s23 = smov 12  }
  0x19   :  { %34 = dma.hbm_to_vmem [thread:$0]  %s1882_s1, 3072, %s29_s20, [#allocation6], %s1474_s22, %s1474_s22, %s1475_s23  }
  0x1a   :  { %1464 = dma.done.wait [#allocation3], 3072  }
  0x1b   :  { %1465 = vsyncadd [#allocation3], 4294964224 }
  0x1c   :  { %1466 = dma.done.wait [#allocation6], 3072  }
  0x1d   :  { %1467 = vsyncadd [#allocation6], 4294964224  ;;  %v1476_v0 = vmov 0.0   ;;  %v1477_v1 = vmov 0   ;;  %vm1478_vm0 = vmmov 0   ;;  %v1479_v26 = vmov 0.0|0.0  }
  0x1e   :  { %1154 = vmatprep.subr.bf16.mxu1 %v1476_v0  ;;  %253 = vmatprep.mubr.bf16.mxu0 %v1477_v1  ;;  %v1511_v2 = vld [vmem:[#allocation5 + $0xac] ss:$12 sps:$4 sm:$0xff]   ;;  %v1513_v3 = vld [vmem:[#allocation5 + $0xa8] ss:$12 sps:$4 sm:$0xff]   ;;  %v1519_v5 = vld [vmem:[#allocation5 + $0x90] ss:$12 sps:$4 sm:$0xff]  }
  0x1f   :  { %1170 = vmatprep.mubr.msk.bf16.mxu1 %vm1478_vm0, %v1476_v0  ;;  %221 = vmatprep.subr.bf16.mxu0 %v1511_v2  ;;  %v1516_v4 = vld [vmem:[#allocation5 + $0x94] ss:$12 sps:$4 sm:$0xff]   ;;  %v1522_v6 = vld [vmem:[#allocation5 + $0x7c] ss:$12 sps:$4 sm:$0xff]   ;;  %v1527_v8 = vld [vmem:[#allocation5 + $0x78] ss:$12 sps:$4 sm:$0xff]  }
  0x20   :  { %222 = vmatpush1.bf16.msra.mxu0 %v1513_v3  ;;  %v1524_v7 = vld [vmem:[#allocation5 + $0xb0] ss:$12 sps:$4 sm:$0xff]   ;;  %v1533_v10 = vld [vmem:[#allocation5 + $0x98] ss:$12 sps:$4 sm:$0xff]   ;;  %v1536_v11 = vld [vmem:[#allocation5 + $0x60] ss:$12 sps:$4 sm:$0xff]  }
  0x21   :  { %223 = vmatprep.subr.bf16.mxu0 %v1516_v4  ;;  %v1529_v9 = vld [vmem:[#allocation5 + $0x64] ss:$12 sps:$4 sm:$0xff]   ;;  %1155 = vmatpush3.bf16.msra.mxu1 %v1524_v7  ;;  %v1539_v12 = vld [vmem:[#allocation5 + $0x4c] ss:$12 sps:$4 sm:$0xff]   ;;  %v1546_v14 = vld [vmem:[#allocation5 + $0x48] ss:$12 sps:$4 sm:$0xff]  }
  0x22   :  { %1156 = vmatprep.subr.bf16.mxu1 %v1476_v0  ;;  %v1543_v13 = vld [vmem:[#allocation5 + $0x80] ss:$12 sps:$4 sm:$0xff]   ;;  %v1553_v16 = vld [vmem:[#allocation5 + $0x68] ss:$12 sps:$4 sm:$0xff]   ;;  %v1557_v17 = vld [vmem:[#allocation5 + $0x30] ss:$12 sps:$4 sm:$0xff]  }
  0x23   :  { %v1549_v15 = vld [vmem:[#allocation5 + $0x34] ss:$12 sps:$4 sm:$0xff]   ;;  %v1560_v18 = vld [vmem:[#allocation5 + $0x1c] ss:$12 sps:$4 sm:$0xff]   ;;  %v1567_v20 = vld [vmem:[#allocation5 + $0x18] ss:$12 sps:$4 sm:$0xff]  }
  0x24   :  { %224 = vmatpush1.bf16.msra.mxu0 %v1519_v5  ;;  %v1563_v19 = vld [vmem:[#allocation5 + $0x50] ss:$12 sps:$4 sm:$0xff]   ;;  %v1573_v22 = vld [vmem:[#allocation5 + $0x38] ss:$12 sps:$4 sm:$0xff]   ;;  %v1577_v23 = vld [vmem:[#allocation5] ss:$12 sps:$4 sm:$0xff]  }
  0x25   :  { %225 = vmatprep.subr.bf16.mxu0 %v1522_v6  ;;  %1157 = vmatpush3.bf16.msra.mxu1 %v1533_v10  ;;  %v1570_v21 = vld [vmem:[#allocation5 + $0x4] ss:$12 sps:$4 sm:$0xff]   ;;  %v1581_v24 = vld [vmem:[#allocation5 + $0x20] ss:$12 sps:$4 sm:$0xff]   ;;  %v1586_v25 = vld [vmem:[#allocation5 + $0x8] ss:$12 sps:$4 sm:$0xff]  }
  0x26   :  { %1158 = vmatprep.subr.bf16.mxu1 %v1476_v0  ;;  %v89_v27 = vld [vmem:[#allocation2] sm:$0xff]  ;;  %v90_v37 = vld [vmem:[#allocation2 + $0x8] sm:$0xff]  ;;  %v91_v46 = vld [vmem:[#allocation2 + $0x10] sm:$0xff] }
  0x27   :  { %v1630_v40 = vld [vmem:[%s1883_s2] ss:$0 sm:$0xff]  ;;  %v320_v57 = vld [vmem:[#allocation2 + $0x18] sm:$0xff]  ;;  %s1480_s2 = smov [#allocation7]  }
  0x28   :  { %226 = vmatpush1.bf16.msra.mxu0 %v1527_v8  ;;  %s1047_s26 = sshll.u32 %s1480_s2, 4  ;;  %s1048_s26 = int_to_ptr.vmem [resolvable:$true] %s1047_s26 }
  0x29   :  { %227 = vmatprep.subr.bf16.mxu0 %v1529_v9  ;;  %1159 = vmatpush3.bf16.msra.mxu1 %v1543_v13  ;;  %s1444_s27 = scalar_lea.vmem %s1048_s26, 128  ;;  %p1449_p11 = scmp.lt.s32.totalorder %s1048_s26, %s1048_s26 }
  0x2a   :  { %1160 = vmatprep.subr.bf16.mxu1 %v1476_v0  ;;  %p1445_p10 = scmp.ne.s32.totalorder %s1048_s26, %s1444_s27  ;;  %p1450_p12 = scmp.lt.s32.totalorder %s1444_s27, %s1444_s27 }
  0x2c   :  { %228 = vmatpush1.bf16.msra.mxu0 %v1536_v11  ;;  %p1451_p13 = por %p1450_p12, %p1449_p11 }
  0x2d   :  { %229 = vmatprep.subr.bf16.mxu0 %v1539_v12  ;;  %1161 = vmatpush3.bf16.msra.mxu1 %v1553_v16 }
  0x2e   :  { %1162 = vmatprep.subr.bf16.mxu1 %v1476_v0  ;;  %p1452_p0 = pnand %p1451_p13, %p1445_p10 }
  0x30   :  { %230 = vmatpush1.bf16.msra.mxu0 %v1546_v14 }
  0x31   :  { %231 = vmatprep.subr.bf16.mxu0 %v1549_v15  ;;  %1163 = vmatpush3.bf16.msra.mxu1 %v1563_v19 }
  0x32   :  { %1164 = vmatprep.subr.bf16.mxu1 %v1476_v0 }
  0x34   :  { %232 = vmatpush1.bf16.msra.mxu0 %v1557_v17 }
  0x35   :  { %233 = vmatprep.subr.bf16.mxu0 %v1560_v18  ;;  %1165 = vmatpush3.bf16.msra.mxu1 %v1573_v22 }
  0x36   :  { %1166 = vmatprep.subr.bf16.mxu1 %v1476_v0 }
  0x38   :  { %234 = vmatpush1.bf16.msra.mxu0 %v1567_v20 }
  0x39   :  { %235 = vmatprep.subr.bf16.mxu0 %v1570_v21  ;;  %1167 = vmatpush3.bf16.msra.mxu1 %v1581_v24 }
  0x3a   :  { %1168 = vmatprep.subr.bf16.mxu1 %v1476_v0 }
  0x3c   :  { %236 = vmatpush1.bf16.msra.mxu0 %v1577_v23 }
  0x3d   :  { %324 = vmatprep.subr.bf16.mxu0 %v1511_v2  ;;  %1169 = vmatpush3.bf16.msra.mxu1 %v1586_v25 }
  0x3e   :  { %1174 = vmatprep.subr.bf16.mxu1 %v1476_v0 }
  0x3f   :  { %254 = vmatmul.mubr.bf16.vlgmr.msra.gmra.mxu0 %v1479_v26 }
  0x40   :  { %325 = vmatpush1.bf16.msra.mxu0 %v1513_v3  ;;  %356 = vmatprep.mubr.bf16.mxu0 %v1477_v1 }
  0x41   :  { %326 = vmatprep.subr.bf16.mxu0 %v1516_v4  ;;  %1171 = vmatmul.mubr.bf16.vlgmr.msra.gmra.mxu1 %v1479_v26 }
  0x42   :  { %1175 = vmatpush3.bf16.msra.mxu1 %v1524_v7  ;;  %1190 = vmatprep.mubr.msk.bf16.mxu1 %vm1478_vm0, %v1476_v0 }
  0x43   :  { %1176 = vmatprep.subr.bf16.mxu1 %v1476_v0 }
  0x44   :  { %327 = vmatpush1.bf16.msra.mxu0 %v1519_v5 }
  0x45   :  { %328 = vmatprep.subr.bf16.mxu0 %v1522_v6 }
  0x46   :  { %1177 = vmatpush3.bf16.msra.mxu1 %v1533_v10 }
  0x47   :  { %1178 = vmatprep.subr.bf16.mxu1 %v1476_v0 }
  0x48   :  { %329 = vmatpush1.bf16.msra.mxu0 %v1527_v8 }
  0x49   :  { %330 = vmatprep.subr.bf16.mxu0 %v1529_v9 }
  0x4a   :  { %1179 = vmatpush3.bf16.msra.mxu1 %v1543_v13 }
  0x4b   :  { %1180 = vmatprep.subr.bf16.mxu1 %v1476_v0 }
  0x4c   :  { %331 = vmatpush1.bf16.msra.mxu0 %v1536_v11 }
  0x4d   :  { %332 = vmatprep.subr.bf16.mxu0 %v1539_v12 }
  0x4e   :  { %1181 = vmatpush3.bf16.msra.mxu1 %v1553_v16 }
  0x4f   :  { %1182 = vmatprep.subr.bf16.mxu1 %v1476_v0 }
  0x50   :  { %333 = vmatpush1.bf16.msra.mxu0 %v1546_v14 }
  0x51   :  { %334 = vmatprep.subr.bf16.mxu0 %v1549_v15 }
  0x52   :  { %1183 = vmatpush3.bf16.msra.mxu1 %v1563_v19 }
  0x53   :  { %1184 = vmatprep.subr.bf16.mxu1 %v1476_v0 }
  0x54   :  { %335 = vmatpush1.bf16.msra.mxu0 %v1557_v17 }
  0x55   :  { %336 = vmatprep.subr.bf16.mxu0 %v1560_v18 }
  0x56   :  { %1185 = vmatpush3.bf16.msra.mxu1 %v1573_v22 }
  0x57   :  { %1186 = vmatprep.subr.bf16.mxu1 %v1476_v0 }
  0x58   :  { %337 = vmatpush1.bf16.msra.mxu0 %v1567_v20 }
  0x59   :  { %338 = vmatprep.subr.bf16.mxu0 %v1570_v21 }
  0x5a   :  { %1187 = vmatpush3.bf16.msra.mxu1 %v1581_v24 }
  0x5b   :  { %1188 = vmatprep.subr.bf16.mxu1 %v1476_v0 }
  0x5c   :  { %339 = vmatpush1.bf16.msra.mxu0 %v1577_v23 }
  0x5d   :  { %427 = vmatprep.subr.bf16.mxu0 %v1511_v2 }
  0x5e   :  { %1189 = vmatpush3.bf16.msra.mxu1 %v1586_v25 }
  0x5f   :  { %1194 = vmatprep.subr.bf16.mxu1 %v1476_v0 }
  0xff   :  { %v255_v28 = vpop.f32.mrf.mxu0 }
 0x100   :  { %v302_v29 = vadd.f32 %v255_v28, %v89_v27 }
 0x101   :  { %v257_v30 = vpop.f32.mrf.mxu0  ;;  %v296_v33 = vpop.f32.mrf.mxu1 }
 0x102   :  { %v303_v31 = vmul.f32 0.5, %v302_v29  ;;  %v307_v39 = vadd.f32 %v257_v30, %v90_v37  ;;  %v312_v44 = vadd.f32 %v1630_v40, %v296_v33  ;;  %v321_v30 = vld [vmem:[#allocation2 + $0x20] sm:$0xff]  ;;  %v322_v37 = vld [vmem:[#allocation2 + $0x28] sm:$0xff] }
 0x103   :  { %v259_v32 = vpop.f32.mrf.mxu0  ;;  %v1172_v35 = vpop.f32.mrf.mxu1 }
 0x104   :  { %1356 = vtanh.f32 %v303_v31  ;;  %v308_v41 = vmul.f32 0.5, %v307_v39 }
 0x105   :  { %v260_v34 = vpop.f32.mrf.mxu0  ;;  %v299_v36 = vpop.f32.mrf.mxu1 }
 0x106   :  { %1358 = vtanh.f32 %v308_v41 }
 0x107   :  { %v1173_v38 = vpop.f32.mrf.mxu1 }
 0x111   :  { %v1357_v42 = vpop.eup %1356 }
 0x112   :  { %v305_v43 = vmul.f32 0.5, %v1357_v42 }
 0x113   :  { %v1359_v49 = vpop.eup %1358 }
 0x114   :  { %v306_v45 = vadd.f32 0.5, %v305_v43  ;;  %v310_v50 = vmul.f32 0.5, %v1359_v49  ;;  %v423_v49 = vld [vmem:[#allocation2 + $0x30] sm:$0xff] }
 0x116   :  { %v313_v47 = vmul.f32 %v312_v44, %v306_v45  ;;  %v311_v52 = vadd.f32 0.5, %v310_v50 }
 0x118   :  { %v314_v48 = vadd.f32 %v313_v47, %v91_v46 }
 0x11a   :  { %1360 = vtanh.f32 %v314_v48 }
 0x127   :  { %v1361_v51 = vpop.eup %1360 }
 0x128   :  { %v316_v53 = vsub.f32 0.0, %v1361_v51 }
 0x12a   :  { %v317_v54 = vmul.f32 %v316_v53, %v311_v52 }
 0x12c   :  { %v1633_v55 = vadd.f32 %v1361_v51, %v317_v54 }
 0x12e   :  { %v323_v56 = vpack.c.bf16 %v1633_v55, %v1633_v55 }
 0x130   :  { %357 = vmatmul.mubr.bf16.vlgmr.msra.gmra.mxu0 %v323_v56  ;;  %1191 = vmatmul.mubr.bf16.vlgmr.msra.gmra.mxu1 %v323_v56 }
 0x131   :  { %428 = vmatpush1.bf16.msra.mxu0 %v1513_v3  ;;  %1195 = vmatpush3.bf16.msra.mxu1 %v1524_v7 }
 0x132   :  { %429 = vmatprep.subr.bf16.mxu0 %v1516_v4  ;;  %1196 = vmatprep.subr.bf16.mxu1 %v1476_v0 }
 0x133   :  { %459 = vmatprep.mubr.bf16.mxu0 %v1477_v1  ;;  %1210 = vmatprep.mubr.msk.bf16.mxu1 %vm1478_vm0, %v1476_v0 }
 0x135   :  { %430 = vmatpush1.bf16.msra.mxu0 %v1519_v5  ;;  %1197 = vmatpush3.bf16.msra.mxu1 %v1533_v10 }
 0x136   :  { %431 = vmatprep.subr.bf16.mxu0 %v1522_v6  ;;  %1198 = vmatprep.subr.bf16.mxu1 %v1476_v0 }
 0x139   :  { %432 = vmatpush1.bf16.msra.mxu0 %v1527_v8  ;;  %1199 = vmatpush3.bf16.msra.mxu1 %v1543_v13 }
 0x13a   :  { %433 = vmatprep.subr.bf16.mxu0 %v1529_v9  ;;  %1200 = vmatprep.subr.bf16.mxu1 %v1476_v0 }
 0x13d   :  { %434 = vmatpush1.bf16.msra.mxu0 %v1536_v11  ;;  %1201 = vmatpush3.bf16.msra.mxu1 %v1553_v16 }
 0x13e   :  { %435 = vmatprep.subr.bf16.mxu0 %v1539_v12  ;;  %1202 = vmatprep.subr.bf16.mxu1 %v1476_v0 }
 0x141   :  { %436 = vmatpush1.bf16.msra.mxu0 %v1546_v14  ;;  %1203 = vmatpush3.bf16.msra.mxu1 %v1563_v19 }
 0x142   :  { %437 = vmatprep.subr.bf16.mxu0 %v1549_v15  ;;  %1204 = vmatprep.subr.bf16.mxu1 %v1476_v0 }
 0x145   :  { %438 = vmatpush1.bf16.msra.mxu0 %v1557_v17  ;;  %1205 = vmatpush3.bf16.msra.mxu1 %v1573_v22 }
 0x146   :  { %439 = vmatprep.subr.bf16.mxu0 %v1560_v18  ;;  %1206 = vmatprep.subr.bf16.mxu1 %v1476_v0 }
 0x149   :  { %440 = vmatpush1.bf16.msra.mxu0 %v1567_v20  ;;  %1207 = vmatpush3.bf16.msra.mxu1 %v1581_v24 }
 0x14a   :  { %441 = vmatprep.subr.bf16.mxu0 %v1570_v21  ;;  %1208 = vmatprep.subr.bf16.mxu1 %v1476_v0 }
 0x14d   :  { %442 = vmatpush1.bf16.msra.mxu0 %v1577_v23  ;;  %1209 = vmatpush3.bf16.msra.mxu1 %v1586_v25 }
 0x14e   :  { %530 = vmatprep.subr.bf16.mxu0 %v1511_v2  ;;  %1214 = vmatprep.subr.bf16.mxu1 %v1476_v0 }
 0x1f0   :  { %v358_v58 = vpop.f32.mrf.mxu0  ;;  %v399_v59 = vpop.f32.mrf.mxu1 }
 0x1f1   :  { %v405_v60 = vadd.f32 %v358_v58, %v320_v57  ;;  %v415_v36 = vadd.f32 %v1630_v40, %v399_v59 }
 0x1f2   :  { %v360_v61 = vpop.f32.mrf.mxu0  ;;  %v1192_v62 = vpop.f32.mrf.mxu1 }
 0x1f3   :  { %v406_v63 = vmul.f32 0.5, %v405_v60  ;;  %v410_v31 = vadd.f32 %v360_v61, %v321_v30  ;;  %v424_v60 = vld [vmem:[#allocation2 + $0x38] sm:$0xff] }
 0x1f4   :  { %v362_v26 = vpop.f32.mrf.mxu0  ;;  %v402_v27 = vpop.f32.mrf.mxu1 }
 0x1f5   :  { %1362 = vtanh.f32 %v406_v63  ;;  %v411_v32 = vmul.f32 0.5, %v410_v31 }
 0x1f6   :  { %v363_v28 = vpop.f32.mrf.mxu0  ;;  %v1193_v29 = vpop.f32.mrf.mxu1 }
 0x1f7   :  { %1364 = vtanh.f32 %v411_v32  ;;  %v425_v29 = vld [vmem:[#allocation2 + $0x40] sm:$0xff] }
 0x202   :  { %v1363_v33 = vpop.eup %1362 }
 0x203   :  { %v408_v34 = vmul.f32 0.5, %v1363_v33 }
 0x204   :  { %v1365_v41 = vpop.eup %1364 }
 0x205   :  { %v409_v35 = vadd.f32 0.5, %v408_v34  ;;  %v413_v42 = vmul.f32 0.5, %v1365_v41  ;;  %v526_v41 = vld [vmem:[#allocation2 + $0x48] sm:$0xff] }
 0x207   :  { %v416_v38 = vmul.f32 %v415_v36, %v409_v35  ;;  %v414_v44 = vadd.f32 0.5, %v413_v42 }
 0x209   :  { %v417_v39 = vadd.f32 %v416_v38, %v322_v37 }
 0x20b   :  { %1366 = vtanh.f32 %v417_v39 }
 0x218   :  { %v1367_v43 = vpop.eup %1366 }
 0x219   :  { %v419_v45 = vsub.f32 %v1633_v55, %v1367_v43 }
 0x21b   :  { %v420_v46 = vmul.f32 %v419_v45, %v414_v44 }
 0x21d   :  { %v1674_v47 = vadd.f32 %v1367_v43, %v420_v46 }
 0x21f   :  { %v426_v48 = vpack.c.bf16 %v1674_v47, %v1674_v47 }
 0x221   :  { %460 = vmatmul.mubr.bf16.vlgmr.msra.gmra.mxu0 %v426_v48  ;;  %1211 = vmatmul.mubr.bf16.vlgmr.msra.gmra.mxu1 %v426_v48 }
 0x222   :  { %531 = vmatpush1.bf16.msra.mxu0 %v1513_v3  ;;  %1215 = vmatpush3.bf16.msra.mxu1 %v1524_v7 }
 0x223   :  { %532 = vmatprep.subr.bf16.mxu0 %v1516_v4  ;;  %1216 = vmatprep.subr.bf16.mxu1 %v1476_v0 }
 0x224   :  { %562 = vmatprep.mubr.bf16.mxu0 %v1477_v1  ;;  %1230 = vmatprep.mubr.msk.bf16.mxu1 %vm1478_vm0, %v1476_v0 }
 0x226   :  { %533 = vmatpush1.bf16.msra.mxu0 %v1519_v5  ;;  %1217 = vmatpush3.bf16.msra.mxu1 %v1533_v10 }
 0x227   :  { %534 = vmatprep.subr.bf16.mxu0 %v1522_v6  ;;  %1218 = vmatprep.subr.bf16.mxu1 %v1476_v0 }
 0x22a   :  { %535 = vmatpush1.bf16.msra.mxu0 %v1527_v8  ;;  %1219 = vmatpush3.bf16.msra.mxu1 %v1543_v13 }
 0x22b   :  { %536 = vmatprep.subr.bf16.mxu0 %v1529_v9  ;;  %1220 = vmatprep.subr.bf16.mxu1 %v1476_v0 }
 0x22e   :  { %537 = vmatpush1.bf16.msra.mxu0 %v1536_v11  ;;  %1221 = vmatpush3.bf16.msra.mxu1 %v1553_v16 }
 0x22f   :  { %538 = vmatprep.subr.bf16.mxu0 %v1539_v12  ;;  %1222 = vmatprep.subr.bf16.mxu1 %v1476_v0 }
 0x232   :  { %539 = vmatpush1.bf16.msra.mxu0 %v1546_v14  ;;  %1223 = vmatpush3.bf16.msra.mxu1 %v1563_v19 }
 0x233   :  { %540 = vmatprep.subr.bf16.mxu0 %v1549_v15  ;;  %1224 = vmatprep.subr.bf16.mxu1 %v1476_v0 }
 0x236   :  { %541 = vmatpush1.bf16.msra.mxu0 %v1557_v17  ;;  %1225 = vmatpush3.bf16.msra.mxu1 %v1573_v22 }
 0x237   :  { %542 = vmatprep.subr.bf16.mxu0 %v1560_v18  ;;  %1226 = vmatprep.subr.bf16.mxu1 %v1476_v0 }
 0x23a   :  { %543 = vmatpush1.bf16.msra.mxu0 %v1567_v20  ;;  %1227 = vmatpush3.bf16.msra.mxu1 %v1581_v24 }
 0x23b   :  { %544 = vmatprep.subr.bf16.mxu0 %v1570_v21  ;;  %1228 = vmatprep.subr.bf16.mxu1 %v1476_v0 }
 0x23e   :  { %545 = vmatpush1.bf16.msra.mxu0 %v1577_v23  ;;  %1229 = vmatpush3.bf16.msra.mxu1 %v1586_v25 }
 0x23f   :  { %633 = vmatprep.subr.bf16.mxu0 %v1511_v2  ;;  %1234 = vmatprep.subr.bf16.mxu1 %v1476_v0 }
 0x2e1   :  { %v461_v50 = vpop.f32.mrf.mxu0  ;;  %v502_v51 = vpop.f32.mrf.mxu1 }
 0x2e2   :  { %v508_v52 = vadd.f32 %v461_v50, %v423_v49  ;;  %v518_v28 = vadd.f32 %v1630_v40, %v502_v51 }
 0x2e3   :  { %v463_v53 = vpop.f32.mrf.mxu0  ;;  %v1212_v54 = vpop.f32.mrf.mxu1 }
 0x2e4   :  { %v509_v55 = vmul.f32 0.5, %v508_v52  ;;  %v513_v61 = vadd.f32 %v463_v53, %v424_v60  ;;  %v527_v52 = vld [vmem:[#allocation2 + $0x50] sm:$0xff] }
 0x2e5   :  { %v465_v56 = vpop.f32.mrf.mxu0  ;;  %v505_v57 = vpop.f32.mrf.mxu1 }
 0x2e6   :  { %1368 = vtanh.f32 %v509_v55  ;;  %v514_v62 = vmul.f32 0.5, %v513_v61 }
 0x2e7   :  { %v466_v58 = vpop.f32.mrf.mxu0  ;;  %v1213_v59 = vpop.f32.mrf.mxu1 }
 0x2e8   :  { %1370 = vtanh.f32 %v514_v62  ;;  %v528_v59 = vld [vmem:[#allocation2 + $0x58] sm:$0xff] }
 0x2f3   :  { %v1369_v63 = vpop.eup %1368 }
 0x2f4   :  { %v511_v26 = vmul.f32 0.5, %v1369_v63 }
 0x2f5   :  { %v1371_v32 = vpop.eup %1370 }
 0x2f6   :  { %v512_v27 = vadd.f32 0.5, %v511_v26  ;;  %v516_v33 = vmul.f32 0.5, %v1371_v32  ;;  %v629_v32 = vld [vmem:[#allocation2 + $0x60] sm:$0xff] }
 0x2f8   :  { %v519_v30 = vmul.f32 %v518_v28, %v512_v27  ;;  %v517_v35 = vadd.f32 0.5, %v516_v33 }
 0x2fa   :  { %v520_v31 = vadd.f32 %v519_v30, %v425_v29 }
 0x2fc   :  { %1372 = vtanh.f32 %v520_v31 }
 0x309   :  { %v1373_v34 = vpop.eup %1372 }
 0x30a   :  { %v522_v36 = vsub.f32 %v1674_v47, %v1373_v34 }
 0x30c   :  { %v523_v37 = vmul.f32 %v522_v36, %v517_v35 }
 0x30e   :  { %v1715_v38 = vadd.f32 %v1373_v34, %v523_v37 }
 0x310   :  { %v529_v39 = vpack.c.bf16 %v1715_v38, %v1715_v38 }
 0x312   :  { %563 = vmatmul.mubr.bf16.vlgmr.msra.gmra.mxu0 %v529_v39  ;;  %1231 = vmatmul.mubr.bf16.vlgmr.msra.gmra.mxu1 %v529_v39 }
 0x313   :  { %634 = vmatpush1.bf16.msra.mxu0 %v1513_v3  ;;  %1235 = vmatpush3.bf16.msra.mxu1 %v1524_v7 }
 0x314   :  { %635 = vmatprep.subr.bf16.mxu0 %v1516_v4  ;;  %1236 = vmatprep.subr.bf16.mxu1 %v1476_v0 }
 0x315   :  { %665 = vmatprep.mubr.bf16.mxu0 %v1477_v1  ;;  %1250 = vmatprep.mubr.msk.bf16.mxu1 %vm1478_vm0, %v1476_v0 }
 0x317   :  { %636 = vmatpush1.bf16.msra.mxu0 %v1519_v5  ;;  %1237 = vmatpush3.bf16.msra.mxu1 %v1533_v10 }
 0x318   :  { %637 = vmatprep.subr.bf16.mxu0 %v1522_v6  ;;  %1238 = vmatprep.subr.bf16.mxu1 %v1476_v0 }
 0x31b   :  { %638 = vmatpush1.bf16.msra.mxu0 %v1527_v8  ;;  %1239 = vmatpush3.bf16.msra.mxu1 %v1543_v13 }
 0x31c   :  { %639 = vmatprep.subr.bf16.mxu0 %v1529_v9  ;;  %1240 = vmatprep.subr.bf16.mxu1 %v1476_v0 }
 0x31f   :  { %640 = vmatpush1.bf16.msra.mxu0 %v1536_v11  ;;  %1241 = vmatpush3.bf16.msra.mxu1 %v1553_v16 }
 0x320   :  { %641 = vmatprep.subr.bf16.mxu0 %v1539_v12  ;;  %1242 = vmatprep.subr.bf16.mxu1 %v1476_v0 }
 0x323   :  { %642 = vmatpush1.bf16.msra.mxu0 %v1546_v14  ;;  %1243 = vmatpush3.bf16.msra.mxu1 %v1563_v19 }
 0x324   :  { %643 = vmatprep.subr.bf16.mxu0 %v1549_v15  ;;  %1244 = vmatprep.subr.bf16.mxu1 %v1476_v0 }
 0x327   :  { %644 = vmatpush1.bf16.msra.mxu0 %v1557_v17  ;;  %1245 = vmatpush3.bf16.msra.mxu1 %v1573_v22 }
 0x328   :  { %645 = vmatprep.subr.bf16.mxu0 %v1560_v18  ;;  %1246 = vmatprep.subr.bf16.mxu1 %v1476_v0 }
 0x32b   :  { %646 = vmatpush1.bf16.msra.mxu0 %v1567_v20  ;;  %1247 = vmatpush3.bf16.msra.mxu1 %v1581_v24 }
 0x32c   :  { %647 = vmatprep.subr.bf16.mxu0 %v1570_v21  ;;  %1248 = vmatprep.subr.bf16.mxu1 %v1476_v0 }
 0x32f   :  { %648 = vmatpush1.bf16.msra.mxu0 %v1577_v23  ;;  %1249 = vmatpush3.bf16.msra.mxu1 %v1586_v25 }
 0x330   :  { %736 = vmatprep.subr.bf16.mxu0 %v1511_v2  ;;  %1254 = vmatprep.subr.bf16.mxu1 %v1476_v0 }
 0x3d2   :  { %v564_v42 = vpop.f32.mrf.mxu0  ;;  %v605_v43 = vpop.f32.mrf.mxu1 }
 0x3d3   :  { %v611_v44 = vadd.f32 %v564_v42, %v526_v41  ;;  %v621_v58 = vadd.f32 %v1630_v40, %v605_v43 }
 0x3d4   :  { %v566_v45 = vpop.f32.mrf.mxu0  ;;  %v1232_v46 = vpop.f32.mrf.mxu1 }
 0x3d5   :  { %v612_v47 = vmul.f32 0.5, %v611_v44  ;;  %v616_v53 = vadd.f32 %v566_v45, %v527_v52  ;;  %v630_v44 = vld [vmem:[#allocation2 + $0x68] sm:$0xff] }
 0x3d6   :  { %v568_v48 = vpop.f32.mrf.mxu0  ;;  %v608_v49 = vpop.f32.mrf.mxu1 }
 0x3d7   :  { %1374 = vtanh.f32 %v612_v47  ;;  %v617_v54 = vmul.f32 0.5, %v616_v53 }
 0x3d8   :  { %v569_v50 = vpop.f32.mrf.mxu0  ;;  %v1233_v51 = vpop.f32.mrf.mxu1 }
 0x3d9   :  { %1376 = vtanh.f32 %v617_v54  ;;  %v631_v51 = vld [vmem:[#allocation2 + $0x70] sm:$0xff] }
 0x3e4   :  { %v1375_v55 = vpop.eup %1374 }
 0x3e5   :  { %v614_v56 = vmul.f32 0.5, %v1375_v55 }
 0x3e6   :  { %v1377_v62 = vpop.eup %1376 }
 0x3e7   :  { %v615_v57 = vadd.f32 0.5, %v614_v56  ;;  %v619_v63 = vmul.f32 0.5, %v1377_v62  ;;  %v732_v62 = vld [vmem:[#allocation2 + $0x78] sm:$0xff] }
 0x3e9   :  { %v622_v60 = vmul.f32 %v621_v58, %v615_v57  ;;  %v620_v27 = vadd.f32 0.5, %v619_v63 }
 0x3eb   :  { %v623_v61 = vadd.f32 %v622_v60, %v528_v59 }
 0x3ed   :  { %1378 = vtanh.f32 %v623_v61 }
 0x3fa   :  { %v1379_v26 = vpop.eup %1378 }
 0x3fb   :  { %v625_v28 = vsub.f32 %v1715_v38, %v1379_v26 }
 0x3fd   :  { %v626_v29 = vmul.f32 %v625_v28, %v620_v27 }
 0x3ff   :  { %v1756_v30 = vadd.f32 %v1379_v26, %v626_v29 }
 0x401   :  { %v632_v31 = vpack.c.bf16 %v1756_v30, %v1756_v30 }
 0x403   :  { %666 = vmatmul.mubr.bf16.vlgmr.msra.gmra.mxu0 %v632_v31  ;;  %1251 = vmatmul.mubr.bf16.vlgmr.msra.gmra.mxu1 %v632_v31 }
 0x404   :  { %737 = vmatpush1.bf16.msra.mxu0 %v1513_v3  ;;  %1255 = vmatpush3.bf16.msra.mxu1 %v1524_v7 }
 0x405   :  { %738 = vmatprep.subr.bf16.mxu0 %v1516_v4  ;;  %1256 = vmatprep.subr.bf16.mxu1 %v1476_v0 }
 0x406   :  { %768 = vmatprep.mubr.bf16.mxu0 %v1477_v1  ;;  %1270 = vmatprep.mubr.msk.bf16.mxu1 %vm1478_vm0, %v1476_v0 }
 0x408   :  { %739 = vmatpush1.bf16.msra.mxu0 %v1519_v5  ;;  %1257 = vmatpush3.bf16.msra.mxu1 %v1533_v10 }
 0x409   :  { %740 = vmatprep.subr.bf16.mxu0 %v1522_v6  ;;  %1258 = vmatprep.subr.bf16.mxu1 %v1476_v0 }
 0x40c   :  { %741 = vmatpush1.bf16.msra.mxu0 %v1527_v8  ;;  %1259 = vmatpush3.bf16.msra.mxu1 %v1543_v13 }
 0x40d   :  { %742 = vmatprep.subr.bf16.mxu0 %v1529_v9  ;;  %1260 = vmatprep.subr.bf16.mxu1 %v1476_v0 }
 0x410   :  { %743 = vmatpush1.bf16.msra.mxu0 %v1536_v11  ;;  %1261 = vmatpush3.bf16.msra.mxu1 %v1553_v16 }
 0x411   :  { %744 = vmatprep.subr.bf16.mxu0 %v1539_v12  ;;  %1262 = vmatprep.subr.bf16.mxu1 %v1476_v0 }
 0x414   :  { %745 = vmatpush1.bf16.msra.mxu0 %v1546_v14  ;;  %1263 = vmatpush3.bf16.msra.mxu1 %v1563_v19 }
 0x415   :  { %746 = vmatprep.subr.bf16.mxu0 %v1549_v15  ;;  %1264 = vmatprep.subr.bf16.mxu1 %v1476_v0 }
 0x418   :  { %747 = vmatpush1.bf16.msra.mxu0 %v1557_v17  ;;  %1265 = vmatpush3.bf16.msra.mxu1 %v1573_v22 }
 0x419   :  { %748 = vmatprep.subr.bf16.mxu0 %v1560_v18  ;;  %1266 = vmatprep.subr.bf16.mxu1 %v1476_v0 }
 0x41c   :  { %749 = vmatpush1.bf16.msra.mxu0 %v1567_v20  ;;  %1267 = vmatpush3.bf16.msra.mxu1 %v1581_v24 }
 0x41d   :  { %750 = vmatprep.subr.bf16.mxu0 %v1570_v21  ;;  %1268 = vmatprep.subr.bf16.mxu1 %v1476_v0 }
 0x420   :  { %751 = vmatpush1.bf16.msra.mxu0 %v1577_v23  ;;  %1269 = vmatpush3.bf16.msra.mxu1 %v1586_v25 }
 0x421   :  { %839 = vmatprep.subr.bf16.mxu0 %v1511_v2  ;;  %1274 = vmatprep.subr.bf16.mxu1 %v1476_v0 }
 0x4c3   :  { %v667_v33 = vpop.f32.mrf.mxu0  ;;  %v708_v34 = vpop.f32.mrf.mxu1 }
 0x4c4   :  { %v714_v35 = vadd.f32 %v667_v33, %v629_v32  ;;  %v724_v50 = vadd.f32 %v1630_v40, %v708_v34 }
 0x4c5   :  { %v669_v36 = vpop.f32.mrf.mxu0  ;;  %v1252_v37 = vpop.f32.mrf.mxu1 }
 0x4c6   :  { %v715_v38 = vmul.f32 0.5, %v714_v35  ;;  %v719_v45 = vadd.f32 %v669_v36, %v630_v44  ;;  %v733_v35 = vld [vmem:[#allocation2 + $0x80] sm:$0xff] }
 0x4c7   :  { %v671_v39 = vpop.f32.mrf.mxu0  ;;  %v711_v41 = vpop.f32.mrf.mxu1 }
 0x4c8   :  { %1380 = vtanh.f32 %v715_v38  ;;  %v720_v46 = vmul.f32 0.5, %v719_v45 }
 0x4c9   :  { %v672_v42 = vpop.f32.mrf.mxu0  ;;  %v1253_v43 = vpop.f32.mrf.mxu1 }
 0x4ca   :  { %1382 = vtanh.f32 %v720_v46  ;;  %v734_v42 = vld [vmem:[#allocation2 + $0x88] sm:$0xff] }
 0x4d5   :  { %v1381_v47 = vpop.eup %1380 }
 0x4d6   :  { %v717_v48 = vmul.f32 0.5, %v1381_v47 }
 0x4d7   :  { %v1383_v54 = vpop.eup %1382 }
 0x4d8   :  { %v718_v49 = vadd.f32 0.5, %v717_v48  ;;  %v722_v55 = vmul.f32 0.5, %v1383_v54 }
 0x4da   :  { %v725_v52 = vmul.f32 %v724_v50, %v718_v49  ;;  %v723_v57 = vadd.f32 0.5, %v722_v55 }
 0x4dc   :  { %v726_v53 = vadd.f32 %v725_v52, %v631_v51 }
 0x4de   :  { %1384 = vtanh.f32 %v726_v53 }
 0x4eb   :  { %v1385_v56 = vpop.eup %1384 }
 0x4ec   :  { %v728_v58 = vsub.f32 %v1756_v30, %v1385_v56 }
 0x4ee   :  { %v729_v59 = vmul.f32 %v728_v58, %v723_v57  ;;  %v938_v57 = vld [vmem:[#allocation2 + $0xa8] sm:$0xff] }
 0x4f0   :  { %v1797_v60 = vadd.f32 %v1385_v56, %v729_v59 }
 0x4f2   :  { %v735_v61 = vpack.c.bf16 %v1797_v60, %v1797_v60 }
 0x4f4   :  { %769 = vmatmul.mubr.bf16.vlgmr.msra.gmra.mxu0 %v735_v61  ;;  %1271 = vmatmul.mubr.bf16.vlgmr.msra.gmra.mxu1 %v735_v61 }
 0x4f5   :  { %840 = vmatpush1.bf16.msra.mxu0 %v1513_v3  ;;  %1275 = vmatpush3.bf16.msra.mxu1 %v1524_v7 }
 0x4f6   :  { %841 = vmatprep.subr.bf16.mxu0 %v1516_v4  ;;  %1276 = vmatprep.subr.bf16.mxu1 %v1476_v0 }
 0x4f7   :  { %871 = vmatprep.mubr.bf16.mxu0 %v1477_v1  ;;  %1290 = vmatprep.mubr.msk.bf16.mxu1 %vm1478_vm0, %v1476_v0 }
 0x4f9   :  { %842 = vmatpush1.bf16.msra.mxu0 %v1519_v5  ;;  %1277 = vmatpush3.bf16.msra.mxu1 %v1533_v10 }
 0x4fa   :  { %843 = vmatprep.subr.bf16.mxu0 %v1522_v6  ;;  %1278 = vmatprep.subr.bf16.mxu1 %v1476_v0 }
 0x4fd   :  { %844 = vmatpush1.bf16.msra.mxu0 %v1527_v8  ;;  %1279 = vmatpush3.bf16.msra.mxu1 %v1543_v13 }
 0x4fe   :  { %845 = vmatprep.subr.bf16.mxu0 %v1529_v9  ;;  %1280 = vmatprep.subr.bf16.mxu1 %v1476_v0 }
 0x501   :  { %846 = vmatpush1.bf16.msra.mxu0 %v1536_v11  ;;  %1281 = vmatpush3.bf16.msra.mxu1 %v1553_v16 }
 0x502   :  { %847 = vmatprep.subr.bf16.mxu0 %v1539_v12  ;;  %1282 = vmatprep.subr.bf16.mxu1 %v1476_v0 }
 0x505   :  { %848 = vmatpush1.bf16.msra.mxu0 %v1546_v14  ;;  %1283 = vmatpush3.bf16.msra.mxu1 %v1563_v19 }
 0x506   :  { %849 = vmatprep.subr.bf16.mxu0 %v1549_v15  ;;  %1284 = vmatprep.subr.bf16.mxu1 %v1476_v0 }
 0x509   :  { %850 = vmatpush1.bf16.msra.mxu0 %v1557_v17  ;;  %1285 = vmatpush3.bf16.msra.mxu1 %v1573_v22 }
 0x50a   :  { %851 = vmatprep.subr.bf16.mxu0 %v1560_v18  ;;  %1286 = vmatprep.subr.bf16.mxu1 %v1476_v0 }
 0x50d   :  { %852 = vmatpush1.bf16.msra.mxu0 %v1567_v20  ;;  %1287 = vmatpush3.bf16.msra.mxu1 %v1581_v24 }
 0x50e   :  { %853 = vmatprep.subr.bf16.mxu0 %v1570_v21  ;;  %1288 = vmatprep.subr.bf16.mxu1 %v1476_v0 }
 0x511   :  { %854 = vmatpush1.bf16.msra.mxu0 %v1577_v23  ;;  %1289 = vmatpush3.bf16.msra.mxu1 %v1586_v25 }
 0x512   :  { %942 = vmatprep.subr.bf16.mxu0 %v1511_v2  ;;  %1294 = vmatprep.subr.bf16.mxu1 %v1476_v0 }
 0x5b4   :  { %v770_v63 = vpop.f32.mrf.mxu0  ;;  %v811_v26 = vpop.f32.mrf.mxu1 }
 0x5b5   :  { %v817_v27 = vadd.f32 %v770_v63, %v732_v62  ;;  %v827_v41 = vadd.f32 %v1630_v40, %v811_v26 }
 0x5b6   :  { %v772_v28 = vpop.f32.mrf.mxu0  ;;  %v1272_v29 = vpop.f32.mrf.mxu1 }
 0x5b7   :  { %v818_v30 = vmul.f32 0.5, %v817_v27  ;;  %v822_v36 = vadd.f32 %v772_v28, %v733_v35 }
 0x5b8   :  { %v774_v31 = vpop.f32.mrf.mxu0  ;;  %v814_v32 = vpop.f32.mrf.mxu1 }
 0x5b9   :  { %1386 = vtanh.f32 %v818_v30  ;;  %v823_v37 = vmul.f32 0.5, %v822_v36  ;;  %v939_v30 = vld [vmem:[#allocation2 + $0xb0] sm:$0xff] }
 0x5ba   :  { %v775_v33 = vpop.f32.mrf.mxu0  ;;  %v1273_v34 = vpop.f32.mrf.mxu1 }
 0x5bb   :  { %1388 = vtanh.f32 %v823_v37  ;;  %v940_v37 = vld [vmem:[#allocation2 + $0xb8] sm:$0xff] }
 0x5c6   :  { %v1387_v38 = vpop.eup %1386 }
 0x5c7   :  { %v820_v39 = vmul.f32 0.5, %v1387_v38 }
 0x5c8   :  { %v1389_v45 = vpop.eup %1388 }
 0x5c9   :  { %v821_v2 = vadd.f32 0.5, %v820_v39  ;;  %v825_v46 = vmul.f32 0.5, %v1389_v45 }
 0x5cb   :  { %v828_v43 = vmul.f32 %v827_v41, %v821_v2  ;;  %v826_v48 = vadd.f32 0.5, %v825_v46 }
 0x5cd   :  { %v829_v44 = vadd.f32 %v828_v43, %v734_v42 }
 0x5cf   :  { %1390 = vtanh.f32 %v829_v44 }
 0x5dc   :  { %v1391_v47 = vpop.eup %1390 }
 0x5dd   :  { %v831_v49 = vsub.f32 %v1797_v60, %v1391_v47 }
 0x5df   :  { %v832_v50 = vmul.f32 %v831_v49, %v826_v48 }
 0x5e1   :  { %v1838_v51 = vadd.f32 %v1391_v47, %v832_v50 }
 0x5e3   :  { %v838_v52 = vpack.c.bf16 %v1838_v51, %v1838_v51 }
 0x5e5   :  { %872 = vmatmul.mubr.bf16.vlgmr.msra.gmra.mxu0 %v838_v52  ;;  %1291 = vmatmul.mubr.bf16.vlgmr.msra.gmra.mxu1 %v838_v52 }
 0x5e6   :  { %943 = vmatpush1.bf16.msra.mxu0 %v1513_v3  ;;  %1295 = vmatpush3.bf16.msra.mxu1 %v1524_v7 }
 0x5e7   :  { %944 = vmatprep.subr.bf16.mxu0 %v1516_v4  ;;  %1296 = vmatprep.subr.bf16.mxu1 %v1476_v0 }
 0x5e8   :  { %974 = vmatprep.mubr.bf16.mxu0 %v1477_v1  ;;  %1310 = vmatprep.mubr.msk.bf16.mxu1 %vm1478_vm0, %v1476_v0  ;;  %v835_v1 = vld [vmem:[#allocation2 + $0x90] sm:$0xff] }
 0x5ea   :  { %945 = vmatpush1.bf16.msra.mxu0 %v1519_v5  ;;  %1297 = vmatpush3.bf16.msra.mxu1 %v1533_v10 }
 0x5eb   :  { %946 = vmatprep.subr.bf16.mxu0 %v1522_v6  ;;  %1298 = vmatprep.subr.bf16.mxu1 %v1476_v0 }
 0x5ee   :  { %947 = vmatpush1.bf16.msra.mxu0 %v1527_v8  ;;  %1299 = vmatpush3.bf16.msra.mxu1 %v1543_v13  ;;  %v836_v13 = vld [vmem:[#allocation2 + $0x98] sm:$0xff] }
 0x5ef   :  { %948 = vmatprep.subr.bf16.mxu0 %v1529_v9  ;;  %1300 = vmatprep.subr.bf16.mxu1 %v1476_v0 }
 0x5f2   :  { %949 = vmatpush1.bf16.msra.mxu0 %v1536_v11  ;;  %1301 = vmatpush3.bf16.msra.mxu1 %v1553_v16 }
 0x5f3   :  { %950 = vmatprep.subr.bf16.mxu0 %v1539_v12  ;;  %1302 = vmatprep.subr.bf16.mxu1 %v1476_v0 }
 0x5f6   :  { %951 = vmatpush1.bf16.msra.mxu0 %v1546_v14  ;;  %1303 = vmatpush3.bf16.msra.mxu1 %v1563_v19  ;;  %v837_v19 = vld [vmem:[#allocation2 + $0xa0] sm:$0xff] }
 0x5f7   :  { %952 = vmatprep.subr.bf16.mxu0 %v1549_v15  ;;  %1304 = vmatprep.subr.bf16.mxu1 %v1476_v0 }
 0x5fa   :  { %953 = vmatpush1.bf16.msra.mxu0 %v1557_v17  ;;  %1305 = vmatpush3.bf16.msra.mxu1 %v1573_v22 }
 0x5fb   :  { %954 = vmatprep.subr.bf16.mxu0 %v1560_v18  ;;  %1306 = vmatprep.subr.bf16.mxu1 %v1476_v0 }
 0x5fe   :  { %955 = vmatpush1.bf16.msra.mxu0 %v1567_v20  ;;  %1307 = vmatpush3.bf16.msra.mxu1 %v1581_v24 }
 0x5ff   :  { %956 = vmatprep.subr.bf16.mxu0 %v1570_v21  ;;  %1308 = vmatprep.subr.bf16.mxu1 %v1476_v0 }
 0x602   :  { %957 = vmatpush1.bf16.msra.mxu0 %v1577_v23  ;;  %1309 = vmatpush3.bf16.msra.mxu1 %v1586_v25 }
 0x6a5   :  { %v873_v3 = vpop.f32.mrf.mxu0  ;;  %v914_v4 = vpop.f32.mrf.mxu1 }
 0x6a6   :  { %v920_v5 = vadd.f32 %v873_v3, %v835_v1  ;;  %v930_v18 = vadd.f32 %v1630_v40, %v914_v4 }
 0x6a7   :  { %v875_v6 = vpop.f32.mrf.mxu0  ;;  %v1292_v7 = vpop.f32.mrf.mxu1 }
 0x6a8   :  { %v921_v8 = vmul.f32 0.5, %v920_v5  ;;  %v925_v14 = vadd.f32 %v875_v6, %v836_v13 }
 0x6a9   :  { %v877_v9 = vpop.f32.mrf.mxu0  ;;  %v917_v10 = vpop.f32.mrf.mxu1 }
 0x6aa   :  { %1392 = vtanh.f32 %v921_v8  ;;  %v926_v15 = vmul.f32 0.5, %v925_v14 }
 0x6ab   :  { %v878_v11 = vpop.f32.mrf.mxu0  ;;  %v1293_v12 = vpop.f32.mrf.mxu1 }
 0x6ac   :  { %1394 = vtanh.f32 %v926_v15 }
 0x6b7   :  { %v1393_v0 = vpop.eup %1392 }
 0x6b8   :  { %v923_v16 = vmul.f32 0.5, %v1393_v0 }
 0x6b9   :  { %v1395_v22 = vpop.eup %1394 }
 0x6ba   :  { %v924_v17 = vadd.f32 0.5, %v923_v16  ;;  %v928_v23 = vmul.f32 0.5, %v1395_v22 }
 0x6bc   :  { %v931_v20 = vmul.f32 %v930_v18, %v924_v17  ;;  %v929_v25 = vadd.f32 0.5, %v928_v23 }
 0x6be   :  { %v932_v21 = vadd.f32 %v931_v20, %v837_v19 }
 0x6c0   :  { %1396 = vtanh.f32 %v932_v21 }
 0x6cd   :  { %v1397_v24 = vpop.eup %1396 }
 0x6ce   :  { %v934_v53 = vsub.f32 %v1838_v51, %v1397_v24 }
 0x6d0   :  { %v935_v54 = vmul.f32 %v934_v53, %v929_v25 }
 0x6d2   :  { %v936_v55 = vadd.f32 %v1397_v24, %v935_v54 }
 0x6d4   :  { %v941_v56 = vpack.c.bf16 %v936_v55, %v936_v55 }
 0x6d6   :  { %975 = vmatmul.mubr.bf16.vlgmr.msra.gmra.mxu0 %v941_v56  ;;  %1311 = vmatmul.mubr.bf16.vlgmr.msra.gmra.mxu1 %v941_v56 }
 0x796   :  { %v976_v58 = vpop.f32.mrf.mxu0  ;;  %v1017_v59 = vpop.f32.mrf.mxu1 }
 0x797   :  { %v1023_v60 = vadd.f32 %v976_v58, %v938_v57  ;;  %v1033_v36 = vadd.f32 %v1630_v40, %v1017_v59 }
 0x798   :  { %v978_v61 = vpop.f32.mrf.mxu0  ;;  %v1312_v62 = vpop.f32.mrf.mxu1 }
 0x799   :  { %v1024_v63 = vmul.f32 0.5, %v1023_v60  ;;  %v1028_v31 = vadd.f32 %v978_v61, %v939_v30 }
 0x79a   :  { %v980_v26 = vpop.f32.mrf.mxu0  ;;  %v1020_v27 = vpop.f32.mrf.mxu1 }
 0x79b   :  { %1398 = vtanh.f32 %v1024_v63  ;;  %v1029_v32 = vmul.f32 0.5, %v1028_v31 }
 0x79c   :  { %v981_v28 = vpop.f32.mrf.mxu0  ;;  %v1313_v29 = vpop.f32.mrf.mxu1 }
 0x79d   :  { %1400 = vtanh.f32 %v1029_v32 }
 0x7a8   :  { %v1399_v33 = vpop.eup %1398 }
 0x7a9   :  { %v1026_v34 = vmul.f32 0.5, %v1399_v33 }
 0x7aa   :  { %v1401_v2 = vpop.eup %1400 }
 0x7ab   :  { %v1027_v35 = vadd.f32 0.5, %v1026_v34  ;;  %v1031_v41 = vmul.f32 0.5, %v1401_v2 }
 0x7ad   :  { %v1034_v38 = vmul.f32 %v1033_v36, %v1027_v35  ;;  %v1032_v43 = vadd.f32 0.5, %v1031_v41 }
 0x7af   :  { %v1035_v39 = vadd.f32 %v1034_v38, %v940_v37 }
 0x7b1   :  { %1402 = vtanh.f32 %v1035_v39 }
 0x7be   :  { %v1403_v42 = vpop.eup %1402 }
 0x7bf   :  { %v1037_v44 = vsub.f32 %v936_v55, %v1403_v42 }
 0x7c1   :  { %v1038_v45 = vmul.f32 %v1037_v44, %v1032_v43 }
 0x7c3   :  { %v1039_v46 = vadd.f32 %v1403_v42, %v1038_v45 }
 0x7c5   :  { %1040 = vst [vmem:[#allocation7] sm:$0xff] %v1039_v46 }
 0x7c6   :  { %1455 = shalt.err (!%p1452_p0)
}
 0x7c7   :  { %1050 = dma.vmem_to_hbm [thread:$0]  %s1048_s26, 128, %s1884_s3, [#allocation4]  }
 0x7c8   :  { %1468 = dma.done.wait [#allocation4], 128  }
 0x7c9   :  { %1469 = vsyncadd [#allocation4], 4294967168 }
 0x7ca   :  { %1054 = vsyncpa [#allocation3], 1 }
 0x7cb   :  { %1055 = vsyncpa [#allocation6], 1 }
 0x7cc   :  { %1056 = vsyncpa [#allocation4], 1 }

</bundles_post_ra>
